<compile_context>
chip_gen: v5e
topology: v5e:2x2
jax: 0.10.0
libtpu: 0.0.40
codegen_flags: <defaults>
</compile_context>

<pallas_src>
import functools
import math

import jax
import jax.numpy as jnp
import numpy as np
from jax import lax
from jax.experimental import pallas as pl
from jax.experimental.pallas import tpu as pltpu

LN_EPS = 1e-5


def _decoder_layer_kernel(tgt_ref, mem_ref, qpos_ref, pos_ref,
                          sa_w_ref, sa_b_ref, ca_w_ref, ca_b_ref,
                          w1_ref, b1_ref, w2_ref, b2_ref,
                          ln_w_ref, ln_b_ref,
                          out_ref, *, nhead, eps):
    """One batch element of the decoder layer.

    tgt_ref  : (1, T, D)   target sequence
    mem_ref  : (1, S, D)   memory sequence
    qpos_ref : (1, T, D)   query positional embedding
    pos_ref  : (1, S, D)   memory positional embedding
    sa_w_ref : (4, D, D)   self-attn  [Wq^T, Wk^T, Wv^T, Wo^T]
    sa_b_ref : (4, D)      self-attn  [bq, bk, bv, bo]
    ca_w_ref : (4, D, D)   cross-attn weights (same packing)
    ca_b_ref : (4, D)
    w1_ref   : (D, F)      linear1 weight (pre-transposed)
    b1_ref   : (1, F)
    w2_ref   : (F, D)      linear2 weight (pre-transposed)
    b2_ref   : (1, D)
    ln_w_ref : (3, D)      [ln1_w, ln2_w, ln3_w]
    ln_b_ref : (3, D)
    out_ref  : (1, T, D)
    """
    x = tgt_ref[0]        # (T, D) f32
    mem = mem_ref[0]      # (S, D)
    qpos = qpos_ref[0]    # (T, D)
    pos = pos_ref[0]      # (S, D)

    sa_w = sa_w_ref[...]  # (4, D, D)
    sa_b = sa_b_ref[...]  # (4, D)
    ca_w = ca_w_ref[...]
    ca_b = ca_b_ref[...]
    ln_w = ln_w_ref[...]  # (3, D)
    ln_b = ln_b_ref[...]

    D = x.shape[-1]
    dh = D // nhead
    scale = 1.0 / math.sqrt(dh)

    def layer_norm(v, g, b):
        # g, b: (1, D) — broadcast over rows
        mu = jnp.mean(v, axis=-1, keepdims=True)
        cen = v - mu
        var = jnp.mean(cen * cen, axis=-1, keepdims=True)
        return cen * lax.rsqrt(var + eps) * g + b

    def mha(q_in, k_in, v_in, w, b):
        # Input projections: lane-dense matmuls contracting over D on the MXU.
        q = jnp.dot(q_in, w[0], preferred_element_type=jnp.float32) + b[0:1, :]
        k = jnp.dot(k_in, w[1], preferred_element_type=jnp.float32) + b[1:2, :]
        v = jnp.dot(v_in, w[2], preferred_element_type=jnp.float32) + b[2:3, :]
        wo = w[3]                                    # (D, D) = Wo^T
        out = jnp.zeros((q_in.shape[0], D), jnp.float32)
        for h in range(nhead):                       # static unroll (4 heads)
            sl = slice(h * dh, (h + 1) * dh)
            qh = q[:, sl] * scale                    # (T, dh)
            kh = k[:, sl]                            # (S, dh)
            vh = v[:, sl]                            # (S, dh)
            s = jnp.dot(qh, kh.T, preferred_element_type=jnp.float32)  # (T, S)
            s = s - jnp.max(s, axis=-1, keepdims=True)
            p = jnp.exp(s)
            p = p / jnp.sum(p, axis=-1, keepdims=True)
            av = jnp.dot(p, vh, preferred_element_type=jnp.float32)    # (T, dh)
            # output projection accumulated per head (rows of Wo^T for head h)
            out = out + jnp.dot(av, wo[sl, :],
                                preferred_element_type=jnp.float32)
        return out + b[3:4, :]

    # ----- self attention + residual + LayerNorm1 -----
    qk = x + qpos
    x = layer_norm(x + mha(qk, qk, x, sa_w, sa_b),
                   ln_w[0:1, :], ln_b[0:1, :])

    # ----- cross attention + residual + LayerNorm2 -----
    x = layer_norm(x + mha(x + qpos, mem + pos, mem, ca_w, ca_b),
                   ln_w[1:2, :], ln_b[1:2, :])

    # ----- feed-forward (relu) + residual + LayerNorm3 -----
    h1 = jnp.dot(x, w1_ref[...], preferred_element_type=jnp.float32) + b1_ref[...]
    h1 = jnp.maximum(h1, 0.0)
    y = jnp.dot(h1, w2_ref[...], preferred_element_type=jnp.float32) + b2_ref[...]
    x = layer_norm(x + y, ln_w[2:3, :], ln_b[2:3, :])

    out_ref[0] = x.astype(out_ref.dtype)


def transformer_decoder_layer(tgt, memory, params, query_pos=None, pos=None,
                              *, nhead):
    """Forward pass (forward_post, eval mode).

    tgt     : (T, B, D)  PyTorch seq-first layout
    memory  : (S, B, D)
    returns : (T, B, D)
    """
    T, B, D = tgt.shape
    S = memory.shape[0]
    dff = params['b1'].shape[0]

    if query_pos is None:
        query_pos = jnp.zeros_like(tgt)
    if pos is None:
        pos = jnp.zeros_like(memory)

    # batch-major so the grid iterates batch elements (parallel -> both TCs on v7x)
    tgt_b = jnp.transpose(tgt, (1, 0, 2))          # (B, T, D)
    mem_b = jnp.transpose(memory, (1, 0, 2))       # (B, S, D)
    qpos_b = jnp.transpose(query_pos, (1, 0, 2))   # (B, T, D)
    pos_b = jnp.transpose(pos, (1, 0, 2))          # (B, S, D)

    def pack_attn(in_w, in_b, out_w, out_b):
        wq, wk, wv = in_w[:D], in_w[D:2 * D], in_w[2 * D:]
        w = jnp.stack([wq.T, wk.T, wv.T, out_w.T], axis=0)            # (4, D, D)
        b = jnp.stack([in_b[:D], in_b[D:2 * D], in_b[2 * D:], out_b], axis=0)
        return w, b

    sa_w, sa_b = pack_attn(params['sa_in_w'], params['sa_in_b'],
                           params['sa_out_w'], params['sa_out_b'])
    ca_w, ca_b = pack_attn(params['ca_in_w'], params['ca_in_b'],
                           params['ca_out_w'], params['ca_out_b'])
    w1 = params['w1'].T                            # (D, F)
    b1 = params['b1'].reshape(1, dff)
    w2 = params['w2'].T                            # (F, D)
    b2 = params['b2'].reshape(1, D)
    ln_w = jnp.stack([params['ln1_w'], params['ln2_w'], params['ln3_w']], 0)
    ln_b = jnp.stack([params['ln1_b'], params['ln2_b'], params['ln3_b']], 0)

    kernel = functools.partial(_decoder_layer_kernel, nhead=nhead, eps=LN_EPS)

    out_bmajor = pl.pallas_call(
        kernel,
        out_shape=jax.ShapeDtypeStruct((B, T, D), jnp.float32),
        grid_spec=pltpu.PrefetchScalarGridSpec(
            num_scalar_prefetch=0,
            grid=(B,),
            in_specs=[
                pl.BlockSpec((1, T, D), lambda b: (b, 0, 0)),    # tgt
                pl.BlockSpec((1, S, D), lambda b: (b, 0, 0)),    # memory
                pl.BlockSpec((1, T, D), lambda b: (b, 0, 0)),    # query_pos
                pl.BlockSpec((1, S, D), lambda b: (b, 0, 0)),    # pos
                pl.BlockSpec((4, D, D), lambda b: (0, 0, 0)),    # sa_w
                pl.BlockSpec((4, D), lambda b: (0, 0)),          # sa_b
                pl.BlockSpec((4, D, D), lambda b: (0, 0, 0)),    # ca_w
                pl.BlockSpec((4, D), lambda b: (0, 0)),          # ca_b
                pl.BlockSpec((D, dff), lambda b: (0, 0)),        # w1
                pl.BlockSpec((1, dff), lambda b: (0, 0)),        # b1
                pl.BlockSpec((dff, D), lambda b: (0, 0)),        # w2
                pl.BlockSpec((1, D), lambda b: (0, 0)),          # b2
                pl.BlockSpec((3, D), lambda b: (0, 0)),          # ln_w
                pl.BlockSpec((3, D), lambda b: (0, 0)),          # ln_b
            ],
            out_specs=pl.BlockSpec((1, T, D), lambda b: (b, 0, 0)),
        ),
        compiler_params=pltpu.CompilerParams(
            dimension_semantics=("parallel",),
        ),
    )(tgt_b, mem_b, qpos_b, pos_b, sa_w, sa_b, ca_w, ca_b,
      w1, b1, w2, b2, ln_w, ln_b)

    return jnp.transpose(out_bmajor, (1, 0, 2))    # back to (T, B, D)


def _reference(tgt, memory, params, query_pos, pos, nhead, eps=LN_EPS):
    """Pure-JAX reference mirroring PyTorch semantics (eval mode)."""
    P = jax.lax.Precision.HIGHEST

    def ln(v, w, b):
        mu = jnp.mean(v, axis=-1, keepdims=True)
        var = jnp.mean((v - mu) ** 2, axis=-1, keepdims=True)
        return (v - mu) / jnp.sqrt(var + eps) * w + b

    def mha(q_in, k_in, v_in, in_w, in_b, out_w, out_b):
        T, B, D = q_in.shape
        S = k_in.shape[0]
        H = nhead
        dh = D // H
        wq, wk, wv = in_w[:D], in_w[D:2 * D], in_w[2 * D:]
        bq, bk, bv = in_b[:D], in_b[D:2 * D], in_b[2 * D:]
        q = jnp.einsum('tbd,ed->tbe', q_in, wq, precision=P) + bq
        k = jnp.einsum('sbd,ed->sbe', k_in, wk, precision=P) + bk
        v = jnp.einsum('sbd,ed->sbe', v_in, wv, precision=P) + bv
        q = q.reshape(T, B, H, dh).transpose(1, 2, 0, 3)   # (B, H, T, dh)
        k = k.reshape(S, B, H, dh).transpose(1, 2, 0, 3)
        v = v.reshape(S, B, H, dh).transpose(1, 2, 0, 3)
        s = jnp.einsum('bhtd,bhsd->bhts', q, k, precision=P) / np.sqrt(dh)
        a = jax.nn.softmax(s, axis=-1)
        o = jnp.einsum('bhts,bhsd->bhtd', a, v, precision=P)
        o = o.transpose(2, 0, 1, 3).reshape(T, B, D)
        return jnp.einsum('tbd,ed->tbe', o, out_w, precision=P) + out_b

    qk = tgt + query_pos
    x = ln(tgt + mha(qk, qk, tgt,
                     params['sa_in_w'], params['sa_in_b'],
                     params['sa_out_w'], params['sa_out_b']),
           params['ln1_w'], params['ln1_b'])
    x = ln(x + mha(x + query_pos, memory + pos, memory,
                   params['ca_in_w'], params['ca_in_b'],
                   params['ca_out_w'], params['ca_out_b']),
           params['ln2_w'], params['ln2_b'])
    h = jax.nn.relu(jnp.einsum('tbd,fd->tbf', x, params['w1'], precision=P)
                    + params['b1'])
    y = jnp.einsum('tbf,df->tbd', h, params['w2'], precision=P) + params['b2']
    return ln(x + y, params['ln3_w'], params['ln3_b'])


if __name__ == "__main__":
    key = jax.random.PRNGKey(0)
    keys = iter(jax.random.split(key, 24))

    # small shapes: tgt seq 8, memory seq 16, batch 2, d_model 32, 4 heads, ffn 64
    T, S, B = 8, 16, 2
    D, H, DFF = 32, 4, 64

    def nrm(k, shape, s=0.1):
        return s * jax.random.normal(k, shape, jnp.float32)

    params = {
        'sa_in_w': nrm(next(keys), (3 * D, D)),
        'sa_in_b': nrm(next(keys), (3 * D,)),
        'sa_out_w': nrm(next(keys), (D, D)),
        'sa_out_b': nrm(next(keys), (D,)),
        'ca_in_w': nrm(next(keys), (3 * D, D)),
        'ca_in_b': nrm(next(keys), (3 * D,)),
        'ca_out_w': nrm(next(keys), (D, D)),
        'ca_out_b': nrm(next(keys), (D,)),
        'w1': nrm(next(keys), (DFF, D)),
        'b1': nrm(next(keys), (DFF,)),
        'w2': nrm(next(keys), (D, DFF)),
        'b2': nrm(next(keys), (D,)),
        'ln1_w': 1.0 + nrm(next(keys), (D,)),
        'ln1_b': nrm(next(keys), (D,)),
        'ln2_w': 1.0 + nrm(next(keys), (D,)),
        'ln2_b': nrm(next(keys), (D,)),
        'ln3_w': 1.0 + nrm(next(keys), (D,)),
        'ln3_b': nrm(next(keys), (D,)),
    }

    tgt = jax.random.normal(next(keys), (T, B, D), jnp.float32)
    memory = jax.random.normal(next(keys), (S, B, D), jnp.float32)
    query_pos = nrm(next(keys), (T, B, D), 1.0)
    pos = nrm(next(keys), (S, B, D), 1.0)

    out = transformer_decoder_layer(tgt, memory, params, query_pos, pos, nhead=H)
    out = jax.block_until_ready(out)

    ref = jax.block_until_ready(_reference(tgt, memory, params, query_pos, pos, H))
    # tolerance covers MXU f32 matmul pass differences vs XLA reference
    np.testing.assert_allclose(np.asarray(out), np.asarray(ref),
                               rtol=1e-2, atol=1e-2)
    print("KERNEL_OK")
</pallas_src>

<mosaic_0001>
module attributes {stable_mosaic.version = 11 : i64} {
  func.func @_decoder_layer_kernel(%arg0: i32, %arg1: memref<1x8x32xf32, #tpu.memory_space<vmem>>, %arg2: memref<1x16x32xf32, #tpu.memory_space<vmem>>, %arg3: memref<1x8x32xf32, #tpu.memory_space<vmem>>, %arg4: memref<1x16x32xf32, #tpu.memory_space<vmem>>, %arg5: memref<4x32x32xf32, #tpu.memory_space<vmem>>, %arg6: memref<4x32xf32, #tpu.memory_space<vmem>>, %arg7: memref<4x32x32xf32, #tpu.memory_space<vmem>>, %arg8: memref<4x32xf32, #tpu.memory_space<vmem>>, %arg9: memref<32x64xf32, #tpu.memory_space<vmem>>, %arg10: memref<1x64xf32, #tpu.memory_space<vmem>>, %arg11: memref<64x32xf32, #tpu.memory_space<vmem>>, %arg12: memref<1x32xf32, #tpu.memory_space<vmem>>, %arg13: memref<3x32xf32, #tpu.memory_space<vmem>>, %arg14: memref<3x32xf32, #tpu.memory_space<vmem>>, %arg15: memref<1x8x32xf32, #tpu.memory_space<vmem>>) attributes {dimension_semantics = [#tpu.dimension_semantics<parallel>], iteration_bounds = array<i64: 2>, scalar_prefetch = 0 : i64, scratch_operands = 0 : i64, tpu.core_type = #tpu.core_type<tc>, window_params = [{transform_indices = @transform_0, window_bounds = array<i64: 1, 8, 32>}, {transform_indices = @transform_1, window_bounds = array<i64: 1, 16, 32>}, {transform_indices = @transform_2, window_bounds = array<i64: 1, 8, 32>}, {transform_indices = @transform_3, window_bounds = array<i64: 1, 16, 32>}, {pipeline_mode = #tpu.pipeline_mode<synchronous>, transform_indices = @transform_4, window_bounds = array<i64: 4, 32, 32>}, {pipeline_mode = #tpu.pipeline_mode<synchronous>, transform_indices = @transform_5, window_bounds = array<i64: 4, 32>}, {pipeline_mode = #tpu.pipeline_mode<synchronous>, transform_indices = @transform_6, window_bounds = array<i64: 4, 32, 32>}, {pipeline_mode = #tpu.pipeline_mode<synchronous>, transform_indices = @transform_7, window_bounds = array<i64: 4, 32>}, {pipeline_mode = #tpu.pipeline_mode<synchronous>, transform_indices = @transform_8, window_bounds = array<i64: 32, 64>}, {pipeline_mode = #tpu.pipeline_mode<synchronous>, transform_indices = @transform_9, window_bounds = array<i64: 1, 64>}, {pipeline_mode = #tpu.pipeline_mode<synchronous>, transform_indices = @transform_10, window_bounds = array<i64: 64, 32>}, {pipeline_mode = #tpu.pipeline_mode<synchronous>, transform_indices = @transform_11, window_bounds = array<i64: 1, 32>}, {pipeline_mode = #tpu.pipeline_mode<synchronous>, transform_indices = @transform_12, window_bounds = array<i64: 3, 32>}, {pipeline_mode = #tpu.pipeline_mode<synchronous>, transform_indices = @transform_13, window_bounds = array<i64: 3, 32>}, {transform_indices = @transform_14, window_bounds = array<i64: 1, 8, 32>}]} {
    %c0 = arith.constant 0 : index
    %c0_0 = arith.constant 0 : index
    %c0_1 = arith.constant 0 : index
    %0 = vector.load %arg1[%c0, %c0_0, %c0_1] : memref<1x8x32xf32, #tpu.memory_space<vmem>>, vector<1x8x32xf32>
    %1 = vector.shape_cast %0 : vector<1x8x32xf32> to vector<8x32xf32>
    %c0_2 = arith.constant 0 : index
    %c0_3 = arith.constant 0 : index
    %c0_4 = arith.constant 0 : index
    %2 = vector.load %arg2[%c0_2, %c0_3, %c0_4] : memref<1x16x32xf32, #tpu.memory_space<vmem>>, vector<1x16x32xf32>
    %3 = vector.shape_cast %2 : vector<1x16x32xf32> to vector<16x32xf32>
    %c0_5 = arith.constant 0 : index
    %c0_6 = arith.constant 0 : index
    %c0_7 = arith.constant 0 : index
    %4 = vector.load %arg3[%c0_5, %c0_6, %c0_7] : memref<1x8x32xf32, #tpu.memory_space<vmem>>, vector<1x8x32xf32>
    %5 = vector.shape_cast %4 : vector<1x8x32xf32> to vector<8x32xf32>
    %c0_8 = arith.constant 0 : index
    %c0_9 = arith.constant 0 : index
    %c0_10 = arith.constant 0 : index
    %6 = vector.load %arg4[%c0_8, %c0_9, %c0_10] : memref<1x16x32xf32, #tpu.memory_space<vmem>>, vector<1x16x32xf32>
    %7 = vector.shape_cast %6 : vector<1x16x32xf32> to vector<16x32xf32>
    %c0_11 = arith.constant 0 : index
    %c0_12 = arith.constant 0 : index
    %c0_13 = arith.constant 0 : index
    %8 = vector.load %arg5[%c0_11, %c0_12, %c0_13] : memref<4x32x32xf32, #tpu.memory_space<vmem>>, vector<4x32x32xf32>
    %c0_14 = arith.constant 0 : index
    %c0_15 = arith.constant 0 : index
    %9 = vector.load %arg6[%c0_14, %c0_15] : memref<4x32xf32, #tpu.memory_space<vmem>>, vector<4x32xf32>
    %c0_16 = arith.constant 0 : index
    %c0_17 = arith.constant 0 : index
    %c0_18 = arith.constant 0 : index
    %10 = vector.load %arg7[%c0_16, %c0_17, %c0_18] : memref<4x32x32xf32, #tpu.memory_space<vmem>>, vector<4x32x32xf32>
    %c0_19 = arith.constant 0 : index
    %c0_20 = arith.constant 0 : index
    %11 = vector.load %arg8[%c0_19, %c0_20] : memref<4x32xf32, #tpu.memory_space<vmem>>, vector<4x32xf32>
    %c0_21 = arith.constant 0 : index
    %c0_22 = arith.constant 0 : index
    %12 = vector.load %arg13[%c0_21, %c0_22] : memref<3x32xf32, #tpu.memory_space<vmem>>, vector<3x32xf32>
    %c0_23 = arith.constant 0 : index
    %c0_24 = arith.constant 0 : index
    %13 = vector.load %arg14[%c0_23, %c0_24] : memref<3x32xf32, #tpu.memory_space<vmem>>, vector<3x32xf32>
    %14 = arith.addf %1, %5 : vector<8x32xf32>
    %15 = vector.extract_strided_slice %8 {offsets = [0, 0, 0], sizes = [1, 32, 32], strides = [1, 1, 1]} : vector<4x32x32xf32> to vector<1x32x32xf32>
    %16 = vector.shape_cast %15 : vector<1x32x32xf32> to vector<32x32xf32>
    %cst = arith.constant dense<0.000000e+00> : vector<8x32xf32>
    %17 = tpu.matmul %14, %16, %cst {dimension_numbers = #tpu.dot_dimension_numbers<[1], [0], [0], [1], [0, 0, 1, 1], [], []>} : vector<8x32xf32>, vector<32x32xf32>, vector<8x32xf32> -> vector<8x32xf32>
    %18 = vector.extract_strided_slice %9 {offsets = [0, 0], sizes = [1, 32], strides = [1, 1]} : vector<4x32xf32> to vector<1x32xf32>
    %19 = vector.broadcast %18 : vector<1x32xf32> to vector<8x32xf32>
    %20 = arith.addf %17, %19 : vector<8x32xf32>
    %21 = vector.extract_strided_slice %8 {offsets = [1, 0, 0], sizes = [1, 32, 32], strides = [1, 1, 1]} : vector<4x32x32xf32> to vector<1x32x32xf32>
    %22 = vector.shape_cast %21 : vector<1x32x32xf32> to vector<32x32xf32>
    %cst_25 = arith.constant dense<0.000000e+00> : vector<8x32xf32>
    %23 = tpu.matmul %14, %22, %cst_25 {dimension_numbers = #tpu.dot_dimension_numbers<[1], [0], [0], [1], [0, 0, 1, 1], [], []>} : vector<8x32xf32>, vector<32x32xf32>, vector<8x32xf32> -> vector<8x32xf32>
    %24 = vector.extract_strided_slice %9 {offsets = [1, 0], sizes = [1, 32], strides = [1, 1]} : vector<4x32xf32> to vector<1x32xf32>
    %25 = vector.broadcast %24 : vector<1x32xf32> to vector<8x32xf32>
    %26 = arith.addf %23, %25 : vector<8x32xf32>
    %27 = vector.extract_strided_slice %8 {offsets = [2, 0, 0], sizes = [1, 32, 32], strides = [1, 1, 1]} : vector<4x32x32xf32> to vector<1x32x32xf32>
    %28 = vector.shape_cast %27 : vector<1x32x32xf32> to vector<32x32xf32>
    %cst_26 = arith.constant dense<0.000000e+00> : vector<8x32xf32>
    %29 = tpu.matmul %1, %28, %cst_26 {dimension_numbers = #tpu.dot_dimension_numbers<[1], [0], [0], [1], [0, 0, 1, 1], [], []>} : vector<8x32xf32>, vector<32x32xf32>, vector<8x32xf32> -> vector<8x32xf32>
    %30 = vector.extract_strided_slice %9 {offsets = [2, 0], sizes = [1, 32], strides = [1, 1]} : vector<4x32xf32> to vector<1x32xf32>
    %31 = vector.broadcast %30 : vector<1x32xf32> to vector<8x32xf32>
    %32 = arith.addf %29, %31 : vector<8x32xf32>
    %33 = vector.extract_strided_slice %8 {offsets = [3, 0, 0], sizes = [1, 32, 32], strides = [1, 1, 1]} : vector<4x32x32xf32> to vector<1x32x32xf32>
    %34 = vector.shape_cast %33 : vector<1x32x32xf32> to vector<32x32xf32>
    %cst_27 = arith.constant 0.000000e+00 : f32
    %35 = vector.broadcast %cst_27 : f32 to vector<8x32xf32>
    %36 = vector.extract_strided_slice %20 {offsets = [0, 0], sizes = [8, 8], strides = [1, 1]} : vector<8x32xf32> to vector<8x8xf32>
    %cst_28 = arith.constant 0.353553385 : f32
    %37 = vector.broadcast %cst_28 : f32 to vector<8x8xf32>
    %38 = arith.mulf %36, %37 : vector<8x8xf32>
    %39 = vector.extract_strided_slice %26 {offsets = [0, 0], sizes = [8, 8], strides = [1, 1]} : vector<8x32xf32> to vector<8x8xf32>
    %40 = vector.extract_strided_slice %32 {offsets = [0, 0], sizes = [8, 8], strides = [1, 1]} : vector<8x32xf32> to vector<8x8xf32>
    %41 = tpu.transpose %39, [1, 0] : vector<8x8xf32> -> vector<8x8xf32>
    %cst_29 = arith.constant dense<0.000000e+00> : vector<8x8xf32>
    %42 = tpu.matmul %38, %41, %cst_29 {dimension_numbers = #tpu.dot_dimension_numbers<[1], [0], [0], [1], [0, 0, 1, 1], [], []>} : vector<8x8xf32>, vector<8x8xf32>, vector<8x8xf32> -> vector<8x8xf32>
    %cst_30 = arith.constant dense<0xFF800000> : vector<8xf32>
    %43 = vector.multi_reduction <maximumf>, %42, %cst_30 [1] : vector<8x8xf32> to vector<8xf32>
    %44 = vector.shape_cast %43 : vector<8xf32> to vector<8x1xf32>
    %45 = vector.broadcast %44 : vector<8x1xf32> to vector<8x8xf32>
    %46 = arith.subf %42, %45 : vector<8x8xf32>
    %47 = math.exp %46 : vector<8x8xf32>
    %cst_31 = arith.constant dense<0.000000e+00> : vector<8xf32>
    %48 = vector.multi_reduction <add>, %47, %cst_31 [1] : vector<8x8xf32> to vector<8xf32>
    %49 = vector.shape_cast %48 : vector<8xf32> to vector<8x1xf32>
    %50 = vector.broadcast %49 : vector<8x1xf32> to vector<8x8xf32>
    %51 = arith.divf %47, %50 : vector<8x8xf32>
    %cst_32 = arith.constant dense<0.000000e+00> : vector<8x8xf32>
    %52 = tpu.matmul %51, %40, %cst_32 {dimension_numbers = #tpu.dot_dimension_numbers<[1], [0], [0], [1], [0, 0, 1, 1], [], []>} : vector<8x8xf32>, vector<8x8xf32>, vector<8x8xf32> -> vector<8x8xf32>
    %53 = vector.extract_strided_slice %34 {offsets = [0, 0], sizes = [8, 32], strides = [1, 1]} : vector<32x32xf32> to vector<8x32xf32>
    %cst_33 = arith.constant dense<0.000000e+00> : vector<8x32xf32>
    %54 = tpu.matmul %52, %53, %cst_33 {dimension_numbers = #tpu.dot_dimension_numbers<[1], [0], [0], [1], [0, 0, 1, 1], [], []>} : vector<8x8xf32>, vector<8x32xf32>, vector<8x32xf32> -> vector<8x32xf32>
    %55 = arith.addf %35, %54 : vector<8x32xf32>
    %56 = vector.extract_strided_slice %20 {offsets = [0, 8], sizes = [8, 8], strides = [1, 1]} : vector<8x32xf32> to vector<8x8xf32>
    %cst_34 = arith.constant 0.353553385 : f32
    %57 = vector.broadcast %cst_34 : f32 to vector<8x8xf32>
    %58 = arith.mulf %56, %57 : vector<8x8xf32>
    %59 = vector.extract_strided_slice %26 {offsets = [0, 8], sizes = [8, 8], strides = [1, 1]} : vector<8x32xf32> to vector<8x8xf32>
    %60 = vector.extract_strided_slice %32 {offsets = [0, 8], sizes = [8, 8], strides = [1, 1]} : vector<8x32xf32> to vector<8x8xf32>
    %61 = tpu.transpose %59, [1, 0] : vector<8x8xf32> -> vector<8x8xf32>
    %cst_35 = arith.constant dense<0.000000e+00> : vector<8x8xf32>
    %62 = tpu.matmul %58, %61, %cst_35 {dimension_numbers = #tpu.dot_dimension_numbers<[1], [0], [0], [1], [0, 0, 1, 1], [], []>} : vector<8x8xf32>, vector<8x8xf32>, vector<8x8xf32> -> vector<8x8xf32>
    %cst_36 = arith.constant dense<0xFF800000> : vector<8xf32>
    %63 = vector.multi_reduction <maximumf>, %62, %cst_36 [1] : vector<8x8xf32> to vector<8xf32>
    %64 = vector.shape_cast %63 : vector<8xf32> to vector<8x1xf32>
    %65 = vector.broadcast %64 : vector<8x1xf32> to vector<8x8xf32>
    %66 = arith.subf %62, %65 : vector<8x8xf32>
    %67 = math.exp %66 : vector<8x8xf32>
    %cst_37 = arith.constant dense<0.000000e+00> : vector<8xf32>
    %68 = vector.multi_reduction <add>, %67, %cst_37 [1] : vector<8x8xf32> to vector<8xf32>
    %69 = vector.shape_cast %68 : vector<8xf32> to vector<8x1xf32>
    %70 = vector.broadcast %69 : vector<8x1xf32> to vector<8x8xf32>
    %71 = arith.divf %67, %70 : vector<8x8xf32>
    %cst_38 = arith.constant dense<0.000000e+00> : vector<8x8xf32>
    %72 = tpu.matmul %71, %60, %cst_38 {dimension_numbers = #tpu.dot_dimension_numbers<[1], [0], [0], [1], [0, 0, 1, 1], [], []>} : vector<8x8xf32>, vector<8x8xf32>, vector<8x8xf32> -> vector<8x8xf32>
    %73 = vector.extract_strided_slice %34 {offsets = [8, 0], sizes = [8, 32], strides = [1, 1]} : vector<32x32xf32> to vector<8x32xf32>
    %cst_39 = arith.constant dense<0.000000e+00> : vector<8x32xf32>
    %74 = tpu.matmul %72, %73, %cst_39 {dimension_numbers = #tpu.dot_dimension_numbers<[1], [0], [0], [1], [0, 0, 1, 1], [], []>} : vector<8x8xf32>, vector<8x32xf32>, vector<8x32xf32> -> vector<8x32xf32>
    %75 = arith.addf %55, %74 : vector<8x32xf32>
    %76 = vector.extract_strided_slice %20 {offsets = [0, 16], sizes = [8, 8], strides = [1, 1]} : vector<8x32xf32> to vector<8x8xf32>
    %cst_40 = arith.constant 0.353553385 : f32
    %77 = vector.broadcast %cst_40 : f32 to vector<8x8xf32>
    %78 = arith.mulf %76, %77 : vector<8x8xf32>
    %79 = vector.extract_strided_slice %26 {offsets = [0, 16], sizes = [8, 8], strides = [1, 1]} : vector<8x32xf32> to vector<8x8xf32>
    %80 = vector.extract_strided_slice %32 {offsets = [0, 16], sizes = [8, 8], strides = [1, 1]} : vector<8x32xf32> to vector<8x8xf32>
    %81 = tpu.transpose %79, [1, 0] : vector<8x8xf32> -> vector<8x8xf32>
    %cst_41 = arith.constant dense<0.000000e+00> : vector<8x8xf32>
    %82 = tpu.matmul %78, %81, %cst_41 {dimension_numbers = #tpu.dot_dimension_numbers<[1], [0], [0], [1], [0, 0, 1, 1], [], []>} : vector<8x8xf32>, vector<8x8xf32>, vector<8x8xf32> -> vector<8x8xf32>
    %cst_42 = arith.constant dense<0xFF800000> : vector<8xf32>
    %83 = vector.multi_reduction <maximumf>, %82, %cst_42 [1] : vector<8x8xf32> to vector<8xf32>
    %84 = vector.shape_cast %83 : vector<8xf32> to vector<8x1xf32>
    %85 = vector.broadcast %84 : vector<8x1xf32> to vector<8x8xf32>
    %86 = arith.subf %82, %85 : vector<8x8xf32>
    %87 = math.exp %86 : vector<8x8xf32>
    %cst_43 = arith.constant dense<0.000000e+00> : vector<8xf32>
    %88 = vector.multi_reduction <add>, %87, %cst_43 [1] : vector<8x8xf32> to vector<8xf32>
    %89 = vector.shape_cast %88 : vector<8xf32> to vector<8x1xf32>
    %90 = vector.broadcast %89 : vector<8x1xf32> to vector<8x8xf32>
    %91 = arith.divf %87, %90 : vector<8x8xf32>
    %cst_44 = arith.constant dense<0.000000e+00> : vector<8x8xf32>
    %92 = tpu.matmul %91, %80, %cst_44 {dimension_numbers = #tpu.dot_dimension_numbers<[1], [0], [0], [1], [0, 0, 1, 1], [], []>} : vector<8x8xf32>, vector<8x8xf32>, vector<8x8xf32> -> vector<8x8xf32>
    %93 = vector.extract_strided_slice %34 {offsets = [16, 0], sizes = [8, 32], strides = [1, 1]} : vector<32x32xf32> to vector<8x32xf32>
    %cst_45 = arith.constant dense<0.000000e+00> : vector<8x32xf32>
    %94 = tpu.matmul %92, %93, %cst_45 {dimension_numbers = #tpu.dot_dimension_numbers<[1], [0], [0], [1], [0, 0, 1, 1], [], []>} : vector<8x8xf32>, vector<8x32xf32>, vector<8x32xf32> -> vector<8x32xf32>
    %95 = arith.addf %75, %94 : vector<8x32xf32>
    %96 = vector.extract_strided_slice %20 {offsets = [0, 24], sizes = [8, 8], strides = [1, 1]} : vector<8x32xf32> to vector<8x8xf32>
    %cst_46 = arith.constant 0.353553385 : f32
    %97 = vector.broadcast %cst_46 : f32 to vector<8x8xf32>
    %98 = arith.mulf %96, %97 : vector<8x8xf32>
    %99 = vector.extract_strided_slice %26 {offsets = [0, 24], sizes = [8, 8], strides = [1, 1]} : vector<8x32xf32> to vector<8x8xf32>
    %100 = vector.extract_strided_slice %32 {offsets = [0, 24], sizes = [8, 8], strides = [1, 1]} : vector<8x32xf32> to vector<8x8xf32>
    %101 = tpu.transpose %99, [1, 0] : vector<8x8xf32> -> vector<8x8xf32>
    %cst_47 = arith.constant dense<0.000000e+00> : vector<8x8xf32>
    %102 = tpu.matmul %98, %101, %cst_47 {dimension_numbers = #tpu.dot_dimension_numbers<[1], [0], [0], [1], [0, 0, 1, 1], [], []>} : vector<8x8xf32>, vector<8x8xf32>, vector<8x8xf32> -> vector<8x8xf32>
    %cst_48 = arith.constant dense<0xFF800000> : vector<8xf32>
    %103 = vector.multi_reduction <maximumf>, %102, %cst_48 [1] : vector<8x8xf32> to vector<8xf32>
    %104 = vector.shape_cast %103 : vector<8xf32> to vector<8x1xf32>
    %105 = vector.broadcast %104 : vector<8x1xf32> to vector<8x8xf32>
    %106 = arith.subf %102, %105 : vector<8x8xf32>
    %107 = math.exp %106 : vector<8x8xf32>
    %cst_49 = arith.constant dense<0.000000e+00> : vector<8xf32>
    %108 = vector.multi_reduction <add>, %107, %cst_49 [1] : vector<8x8xf32> to vector<8xf32>
    %109 = vector.shape_cast %108 : vector<8xf32> to vector<8x1xf32>
    %110 = vector.broadcast %109 : vector<8x1xf32> to vector<8x8xf32>
    %111 = arith.divf %107, %110 : vector<8x8xf32>
    %cst_50 = arith.constant dense<0.000000e+00> : vector<8x8xf32>
    %112 = tpu.matmul %111, %100, %cst_50 {dimension_numbers = #tpu.dot_dimension_numbers<[1], [0], [0], [1], [0, 0, 1, 1], [], []>} : vector<8x8xf32>, vector<8x8xf32>, vector<8x8xf32> -> vector<8x8xf32>
    %113 = vector.extract_strided_slice %34 {offsets = [24, 0], sizes = [8, 32], strides = [1, 1]} : vector<32x32xf32> to vector<8x32xf32>
    %cst_51 = arith.constant dense<0.000000e+00> : vector<8x32xf32>
    %114 = tpu.matmul %112, %113, %cst_51 {dimension_numbers = #tpu.dot_dimension_numbers<[1], [0], [0], [1], [0, 0, 1, 1], [], []>} : vector<8x8xf32>, vector<8x32xf32>, vector<8x32xf32> -> vector<8x32xf32>
    %115 = arith.addf %95, %114 : vector<8x32xf32>
    %116 = vector.extract_strided_slice %9 {offsets = [3, 0], sizes = [1, 32], strides = [1, 1]} : vector<4x32xf32> to vector<1x32xf32>
    %117 = vector.broadcast %116 : vector<1x32xf32> to vector<8x32xf32>
    %118 = arith.addf %115, %117 : vector<8x32xf32>
    %119 = arith.addf %1, %118 : vector<8x32xf32>
    %120 = vector.extract_strided_slice %12 {offsets = [0, 0], sizes = [1, 32], strides = [1, 1]} : vector<3x32xf32> to vector<1x32xf32>
    %121 = vector.extract_strided_slice %13 {offsets = [0, 0], sizes = [1, 32], strides = [1, 1]} : vector<3x32xf32> to vector<1x32xf32>
    %cst_52 = arith.constant dense<0.000000e+00> : vector<8xf32>
    %122 = vector.multi_reduction <add>, %119, %cst_52 [1] : vector<8x32xf32> to vector<8xf32>
    %123 = vector.shape_cast %122 : vector<8xf32> to vector<8x1xf32>
    %cst_53 = arith.constant 3.200000e+01 : f32
    %124 = vector.broadcast %cst_53 : f32 to vector<8x1xf32>
    %125 = arith.divf %123, %124 : vector<8x1xf32>
    %126 = vector.broadcast %125 : vector<8x1xf32> to vector<8x32xf32>
    %127 = arith.subf %119, %126 : vector<8x32xf32>
    %128 = arith.mulf %127, %127 : vector<8x32xf32>
    %cst_54 = arith.constant dense<0.000000e+00> : vector<8xf32>
    %129 = vector.multi_reduction <add>, %128, %cst_54 [1] : vector<8x32xf32> to vector<8xf32>
    %130 = vector.shape_cast %129 : vector<8xf32> to vector<8x1xf32>
    %cst_55 = arith.constant 3.200000e+01 : f32
    %131 = vector.broadcast %cst_55 : f32 to vector<8x1xf32>
    %132 = arith.divf %130, %131 : vector<8x1xf32>
    %cst_56 = arith.constant 9.99999974E-6 : f32
    %133 = vector.broadcast %cst_56 : f32 to vector<8x1xf32>
    %134 = arith.addf %132, %133 : vector<8x1xf32>
    %135 = math.rsqrt %134 : vector<8x1xf32>
    %136 = vector.broadcast %135 : vector<8x1xf32> to vector<8x32xf32>
    %137 = arith.mulf %127, %136 : vector<8x32xf32>
    %138 = vector.broadcast %120 : vector<1x32xf32> to vector<8x32xf32>
    %139 = arith.mulf %137, %138 : vector<8x32xf32>
    %140 = vector.broadcast %121 : vector<1x32xf32> to vector<8x32xf32>
    %141 = arith.addf %139, %140 : vector<8x32xf32>
    %142 = arith.addf %141, %5 : vector<8x32xf32>
    %143 = arith.addf %3, %7 : vector<16x32xf32>
    %144 = vector.extract_strided_slice %10 {offsets = [0, 0, 0], sizes = [1, 32, 32], strides = [1, 1, 1]} : vector<4x32x32xf32> to vector<1x32x32xf32>
    %145 = vector.shape_cast %144 : vector<1x32x32xf32> to vector<32x32xf32>
    %cst_57 = arith.constant dense<0.000000e+00> : vector<8x32xf32>
    %146 = tpu.matmul %142, %145, %cst_57 {dimension_numbers = #tpu.dot_dimension_numbers<[1], [0], [0], [1], [0, 0, 1, 1], [], []>} : vector<8x32xf32>, vector<32x32xf32>, vector<8x32xf32> -> vector<8x32xf32>
    %147 = vector.extract_strided_slice %11 {offsets = [0, 0], sizes = [1, 32], strides = [1, 1]} : vector<4x32xf32> to vector<1x32xf32>
    %148 = vector.broadcast %147 : vector<1x32xf32> to vector<8x32xf32>
    %149 = arith.addf %146, %148 : vector<8x32xf32>
    %150 = vector.extract_strided_slice %10 {offsets = [1, 0, 0], sizes = [1, 32, 32], strides = [1, 1, 1]} : vector<4x32x32xf32> to vector<1x32x32xf32>
    %151 = vector.shape_cast %150 : vector<1x32x32xf32> to vector<32x32xf32>
    %cst_58 = arith.constant dense<0.000000e+00> : vector<16x32xf32>
    %152 = tpu.matmul %143, %151, %cst_58 {dimension_numbers = #tpu.dot_dimension_numbers<[1], [0], [0], [1], [0, 0, 1, 1], [], []>} : vector<16x32xf32>, vector<32x32xf32>, vector<16x32xf32> -> vector<16x32xf32>
    %153 = vector.extract_strided_slice %11 {offsets = [1, 0], sizes = [1, 32], strides = [1, 1]} : vector<4x32xf32> to vector<1x32xf32>
    %154 = vector.broadcast %153 : vector<1x32xf32> to vector<16x32xf32>
    %155 = arith.addf %152, %154 : vector<16x32xf32>
    %156 = vector.extract_strided_slice %10 {offsets = [2, 0, 0], sizes = [1, 32, 32], strides = [1, 1, 1]} : vector<4x32x32xf32> to vector<1x32x32xf32>
    %157 = vector.shape_cast %156 : vector<1x32x32xf32> to vector<32x32xf32>
    %cst_59 = arith.constant dense<0.000000e+00> : vector<16x32xf32>
    %158 = tpu.matmul %3, %157, %cst_59 {dimension_numbers = #tpu.dot_dimension_numbers<[1], [0], [0], [1], [0, 0, 1, 1], [], []>} : vector<16x32xf32>, vector<32x32xf32>, vector<16x32xf32> -> vector<16x32xf32>
    %159 = vector.extract_strided_slice %11 {offsets = [2, 0], sizes = [1, 32], strides = [1, 1]} : vector<4x32xf32> to vector<1x32xf32>
    %160 = vector.broadcast %159 : vector<1x32xf32> to vector<16x32xf32>
    %161 = arith.addf %158, %160 : vector<16x32xf32>
    %162 = vector.extract_strided_slice %10 {offsets = [3, 0, 0], sizes = [1, 32, 32], strides = [1, 1, 1]} : vector<4x32x32xf32> to vector<1x32x32xf32>
    %163 = vector.shape_cast %162 : vector<1x32x32xf32> to vector<32x32xf32>
    %cst_60 = arith.constant 0.000000e+00 : f32
    %164 = vector.broadcast %cst_60 : f32 to vector<8x32xf32>
    %165 = vector.extract_strided_slice %149 {offsets = [0, 0], sizes = [8, 8], strides = [1, 1]} : vector<8x32xf32> to vector<8x8xf32>
    %cst_61 = arith.constant 0.353553385 : f32
    %166 = vector.broadcast %cst_61 : f32 to vector<8x8xf32>
    %167 = arith.mulf %165, %166 : vector<8x8xf32>
    %168 = vector.extract_strided_slice %155 {offsets = [0, 0], sizes = [16, 8], strides = [1, 1]} : vector<16x32xf32> to vector<16x8xf32>
    %169 = vector.extract_strided_slice %161 {offsets = [0, 0], sizes = [16, 8], strides = [1, 1]} : vector<16x32xf32> to vector<16x8xf32>
    %170 = tpu.transpose %168, [1, 0] : vector<16x8xf32> -> vector<8x16xf32>
    %cst_62 = arith.constant dense<0.000000e+00> : vector<8x16xf32>
    %171 = tpu.matmul %167, %170, %cst_62 {dimension_numbers = #tpu.dot_dimension_numbers<[1], [0], [0], [1], [0, 0, 1, 1], [], []>} : vector<8x8xf32>, vector<8x16xf32>, vector<8x16xf32> -> vector<8x16xf32>
    %cst_63 = arith.constant dense<0xFF800000> : vector<8xf32>
    %172 = vector.multi_reduction <maximumf>, %171, %cst_63 [1] : vector<8x16xf32> to vector<8xf32>
    %173 = vector.shape_cast %172 : vector<8xf32> to vector<8x1xf32>
    %174 = vector.broadcast %173 : vector<8x1xf32> to vector<8x16xf32>
    %175 = arith.subf %171, %174 : vector<8x16xf32>
    %176 = math.exp %175 : vector<8x16xf32>
    %cst_64 = arith.constant dense<0.000000e+00> : vector<8xf32>
    %177 = vector.multi_reduction <add>, %176, %cst_64 [1] : vector<8x16xf32> to vector<8xf32>
    %178 = vector.shape_cast %177 : vector<8xf32> to vector<8x1xf32>
    %179 = vector.broadcast %178 : vector<8x1xf32> to vector<8x16xf32>
    %180 = arith.divf %176, %179 : vector<8x16xf32>
    %cst_65 = arith.constant dense<0.000000e+00> : vector<8x8xf32>
    %181 = tpu.matmul %180, %169, %cst_65 {dimension_numbers = #tpu.dot_dimension_numbers<[1], [0], [0], [1], [0, 0, 1, 1], [], []>} : vector<8x16xf32>, vector<16x8xf32>, vector<8x8xf32> -> vector<8x8xf32>
    %182 = vector.extract_strided_slice %163 {offsets = [0, 0], sizes = [8, 32], strides = [1, 1]} : vector<32x32xf32> to vector<8x32xf32>
    %cst_66 = arith.constant dense<0.000000e+00> : vector<8x32xf32>
    %183 = tpu.matmul %181, %182, %cst_66 {dimension_numbers = #tpu.dot_dimension_numbers<[1], [0], [0], [1], [0, 0, 1, 1], [], []>} : vector<8x8xf32>, vector<8x32xf32>, vector<8x32xf32> -> vector<8x32xf32>
    %184 = arith.addf %164, %183 : vector<8x32xf32>
    %185 = vector.extract_strided_slice %149 {offsets = [0, 8], sizes = [8, 8], strides = [1, 1]} : vector<8x32xf32> to vector<8x8xf32>
    %cst_67 = arith.constant 0.353553385 : f32
    %186 = vector.broadcast %cst_67 : f32 to vector<8x8xf32>
    %187 = arith.mulf %185, %186 : vector<8x8xf32>
    %188 = vector.extract_strided_slice %155 {offsets = [0, 8], sizes = [16, 8], strides = [1, 1]} : vector<16x32xf32> to vector<16x8xf32>
    %189 = vector.extract_strided_slice %161 {offsets = [0, 8], sizes = [16, 8], strides = [1, 1]} : vector<16x32xf32> to vector<16x8xf32>
    %190 = tpu.transpose %188, [1, 0] : vector<16x8xf32> -> vector<8x16xf32>
    %cst_68 = arith.constant dense<0.000000e+00> : vector<8x16xf32>
    %191 = tpu.matmul %187, %190, %cst_68 {dimension_numbers = #tpu.dot_dimension_numbers<[1], [0], [0], [1], [0, 0, 1, 1], [], []>} : vector<8x8xf32>, vector<8x16xf32>, vector<8x16xf32> -> vector<8x16xf32>
    %cst_69 = arith.constant dense<0xFF800000> : vector<8xf32>
    %192 = vector.multi_reduction <maximumf>, %191, %cst_69 [1] : vector<8x16xf32> to vector<8xf32>
    %193 = vector.shape_cast %192 : vector<8xf32> to vector<8x1xf32>
    %194 = vector.broadcast %193 : vector<8x1xf32> to vector<8x16xf32>
    %195 = arith.subf %191, %194 : vector<8x16xf32>
    %196 = math.exp %195 : vector<8x16xf32>
    %cst_70 = arith.constant dense<0.000000e+00> : vector<8xf32>
    %197 = vector.multi_reduction <add>, %196, %cst_70 [1] : vector<8x16xf32> to vector<8xf32>
    %198 = vector.shape_cast %197 : vector<8xf32> to vector<8x1xf32>
    %199 = vector.broadcast %198 : vector<8x1xf32> to vector<8x16xf32>
    %200 = arith.divf %196, %199 : vector<8x16xf32>
    %cst_71 = arith.constant dense<0.000000e+00> : vector<8x8xf32>
    %201 = tpu.matmul %200, %189, %cst_71 {dimension_numbers = #tpu.dot_dimension_numbers<[1], [0], [0], [1], [0, 0, 1, 1], [], []>} : vector<8x16xf32>, vector<16x8xf32>, vector<8x8xf32> -> vector<8x8xf32>
    %202 = vector.extract_strided_slice %163 {offsets = [8, 0], sizes = [8, 32], strides = [1, 1]} : vector<32x32xf32> to vector<8x32xf32>
    %cst_72 = arith.constant dense<0.000000e+00> : vector<8x32xf32>
    %203 = tpu.matmul %201, %202, %cst_72 {dimension_numbers = #tpu.dot_dimension_numbers<[1], [0], [0], [1], [0, 0, 1, 1], [], []>} : vector<8x8xf32>, vector<8x32xf32>, vector<8x32xf32> -> vector<8x32xf32>
    %204 = arith.addf %184, %203 : vector<8x32xf32>
    %205 = vector.extract_strided_slice %149 {offsets = [0, 16], sizes = [8, 8], strides = [1, 1]} : vector<8x32xf32> to vector<8x8xf32>
    %cst_73 = arith.constant 0.353553385 : f32
    %206 = vector.broadcast %cst_73 : f32 to vector<8x8xf32>
    %207 = arith.mulf %205, %206 : vector<8x8xf32>
    %208 = vector.extract_strided_slice %155 {offsets = [0, 16], sizes = [16, 8], strides = [1, 1]} : vector<16x32xf32> to vector<16x8xf32>
    %209 = vector.extract_strided_slice %161 {offsets = [0, 16], sizes = [16, 8], strides = [1, 1]} : vector<16x32xf32> to vector<16x8xf32>
    %210 = tpu.transpose %208, [1, 0] : vector<16x8xf32> -> vector<8x16xf32>
    %cst_74 = arith.constant dense<0.000000e+00> : vector<8x16xf32>
    %211 = tpu.matmul %207, %210, %cst_74 {dimension_numbers = #tpu.dot_dimension_numbers<[1], [0], [0], [1], [0, 0, 1, 1], [], []>} : vector<8x8xf32>, vector<8x16xf32>, vector<8x16xf32> -> vector<8x16xf32>
    %cst_75 = arith.constant dense<0xFF800000> : vector<8xf32>
    %212 = vector.multi_reduction <maximumf>, %211, %cst_75 [1] : vector<8x16xf32> to vector<8xf32>
    %213 = vector.shape_cast %212 : vector<8xf32> to vector<8x1xf32>
    %214 = vector.broadcast %213 : vector<8x1xf32> to vector<8x16xf32>
    %215 = arith.subf %211, %214 : vector<8x16xf32>
    %216 = math.exp %215 : vector<8x16xf32>
    %cst_76 = arith.constant dense<0.000000e+00> : vector<8xf32>
    %217 = vector.multi_reduction <add>, %216, %cst_76 [1] : vector<8x16xf32> to vector<8xf32>
    %218 = vector.shape_cast %217 : vector<8xf32> to vector<8x1xf32>
    %219 = vector.broadcast %218 : vector<8x1xf32> to vector<8x16xf32>
    %220 = arith.divf %216, %219 : vector<8x16xf32>
    %cst_77 = arith.constant dense<0.000000e+00> : vector<8x8xf32>
    %221 = tpu.matmul %220, %209, %cst_77 {dimension_numbers = #tpu.dot_dimension_numbers<[1], [0], [0], [1], [0, 0, 1, 1], [], []>} : vector<8x16xf32>, vector<16x8xf32>, vector<8x8xf32> -> vector<8x8xf32>
    %222 = vector.extract_strided_slice %163 {offsets = [16, 0], sizes = [8, 32], strides = [1, 1]} : vector<32x32xf32> to vector<8x32xf32>
    %cst_78 = arith.constant dense<0.000000e+00> : vector<8x32xf32>
    %223 = tpu.matmul %221, %222, %cst_78 {dimension_numbers = #tpu.dot_dimension_numbers<[1], [0], [0], [1], [0, 0, 1, 1], [], []>} : vector<8x8xf32>, vector<8x32xf32>, vector<8x32xf32> -> vector<8x32xf32>
    %224 = arith.addf %204, %223 : vector<8x32xf32>
    %225 = vector.extract_strided_slice %149 {offsets = [0, 24], sizes = [8, 8], strides = [1, 1]} : vector<8x32xf32> to vector<8x8xf32>
    %cst_79 = arith.constant 0.353553385 : f32
    %226 = vector.broadcast %cst_79 : f32 to vector<8x8xf32>
    %227 = arith.mulf %225, %226 : vector<8x8xf32>
    %228 = vector.extract_strided_slice %155 {offsets = [0, 24], sizes = [16, 8], strides = [1, 1]} : vector<16x32xf32> to vector<16x8xf32>
    %229 = vector.extract_strided_slice %161 {offsets = [0, 24], sizes = [16, 8], strides = [1, 1]} : vector<16x32xf32> to vector<16x8xf32>
    %230 = tpu.transpose %228, [1, 0] : vector<16x8xf32> -> vector<8x16xf32>
    %cst_80 = arith.constant dense<0.000000e+00> : vector<8x16xf32>
    %231 = tpu.matmul %227, %230, %cst_80 {dimension_numbers = #tpu.dot_dimension_numbers<[1], [0], [0], [1], [0, 0, 1, 1], [], []>} : vector<8x8xf32>, vector<8x16xf32>, vector<8x16xf32> -> vector<8x16xf32>
    %cst_81 = arith.constant dense<0xFF800000> : vector<8xf32>
    %232 = vector.multi_reduction <maximumf>, %231, %cst_81 [1] : vector<8x16xf32> to vector<8xf32>
    %233 = vector.shape_cast %232 : vector<8xf32> to vector<8x1xf32>
    %234 = vector.broadcast %233 : vector<8x1xf32> to vector<8x16xf32>
    %235 = arith.subf %231, %234 : vector<8x16xf32>
    %236 = math.exp %235 : vector<8x16xf32>
    %cst_82 = arith.constant dense<0.000000e+00> : vector<8xf32>
    %237 = vector.multi_reduction <add>, %236, %cst_82 [1] : vector<8x16xf32> to vector<8xf32>
    %238 = vector.shape_cast %237 : vector<8xf32> to vector<8x1xf32>
    %239 = vector.broadcast %238 : vector<8x1xf32> to vector<8x16xf32>
    %240 = arith.divf %236, %239 : vector<8x16xf32>
    %cst_83 = arith.constant dense<0.000000e+00> : vector<8x8xf32>
    %241 = tpu.matmul %240, %229, %cst_83 {dimension_numbers = #tpu.dot_dimension_numbers<[1], [0], [0], [1], [0, 0, 1, 1], [], []>} : vector<8x16xf32>, vector<16x8xf32>, vector<8x8xf32> -> vector<8x8xf32>
    %242 = vector.extract_strided_slice %163 {offsets = [24, 0], sizes = [8, 32], strides = [1, 1]} : vector<32x32xf32> to vector<8x32xf32>
    %cst_84 = arith.constant dense<0.000000e+00> : vector<8x32xf32>
    %243 = tpu.matmul %241, %242, %cst_84 {dimension_numbers = #tpu.dot_dimension_numbers<[1], [0], [0], [1], [0, 0, 1, 1], [], []>} : vector<8x8xf32>, vector<8x32xf32>, vector<8x32xf32> -> vector<8x32xf32>
    %244 = arith.addf %224, %243 : vector<8x32xf32>
    %245 = vector.extract_strided_slice %11 {offsets = [3, 0], sizes = [1, 32], strides = [1, 1]} : vector<4x32xf32> to vector<1x32xf32>
    %246 = vector.broadcast %245 : vector<1x32xf32> to vector<8x32xf32>
    %247 = arith.addf %244, %246 : vector<8x32xf32>
    %248 = arith.addf %141, %247 : vector<8x32xf32>
    %249 = vector.extract_strided_slice %12 {offsets = [1, 0], sizes = [1, 32], strides = [1, 1]} : vector<3x32xf32> to vector<1x32xf32>
    %250 = vector.extract_strided_slice %13 {offsets = [1, 0], sizes = [1, 32], strides = [1, 1]} : vector<3x32xf32> to vector<1x32xf32>
    %cst_85 = arith.constant dense<0.000000e+00> : vector<8xf32>
    %251 = vector.multi_reduction <add>, %248, %cst_85 [1] : vector<8x32xf32> to vector<8xf32>
    %252 = vector.shape_cast %251 : vector<8xf32> to vector<8x1xf32>
    %cst_86 = arith.constant 3.200000e+01 : f32
    %253 = vector.broadcast %cst_86 : f32 to vector<8x1xf32>
    %254 = arith.divf %252, %253 : vector<8x1xf32>
    %255 = vector.broadcast %254 : vector<8x1xf32> to vector<8x32xf32>
    %256 = arith.subf %248, %255 : vector<8x32xf32>
    %257 = arith.mulf %256, %256 : vector<8x32xf32>
    %cst_87 = arith.constant dense<0.000000e+00> : vector<8xf32>
    %258 = vector.multi_reduction <add>, %257, %cst_87 [1] : vector<8x32xf32> to vector<8xf32>
    %259 = vector.shape_cast %258 : vector<8xf32> to vector<8x1xf32>
    %cst_88 = arith.constant 3.200000e+01 : f32
    %260 = vector.broadcast %cst_88 : f32 to vector<8x1xf32>
    %261 = arith.divf %259, %260 : vector<8x1xf32>
    %cst_89 = arith.constant 9.99999974E-6 : f32
    %262 = vector.broadcast %cst_89 : f32 to vector<8x1xf32>
    %263 = arith.addf %261, %262 : vector<8x1xf32>
    %264 = math.rsqrt %263 : vector<8x1xf32>
    %265 = vector.broadcast %264 : vector<8x1xf32> to vector<8x32xf32>
    %266 = arith.mulf %256, %265 : vector<8x32xf32>
    %267 = vector.broadcast %249 : vector<1x32xf32> to vector<8x32xf32>
    %268 = arith.mulf %266, %267 : vector<8x32xf32>
    %269 = vector.broadcast %250 : vector<1x32xf32> to vector<8x32xf32>
    %270 = arith.addf %268, %269 : vector<8x32xf32>
    %c0_90 = arith.constant 0 : index
    %c0_91 = arith.constant 0 : index
    %271 = vector.load %arg9[%c0_90, %c0_91] : memref<32x64xf32, #tpu.memory_space<vmem>>, vector<32x64xf32>
    %cst_92 = arith.constant dense<0.000000e+00> : vector<8x64xf32>
    %272 = tpu.matmul %270, %271, %cst_92 {dimension_numbers = #tpu.dot_dimension_numbers<[1], [0], [0], [1], [0, 0, 1, 1], [], []>} : vector<8x32xf32>, vector<32x64xf32>, vector<8x64xf32> -> vector<8x64xf32>
    %c0_93 = arith.constant 0 : index
    %c0_94 = arith.constant 0 : index
    %273 = vector.load %arg10[%c0_93, %c0_94] : memref<1x64xf32, #tpu.memory_space<vmem>>, vector<1x64xf32>
    %274 = vector.broadcast %273 : vector<1x64xf32> to vector<8x64xf32>
    %275 = arith.addf %272, %274 : vector<8x64xf32>
    %cst_95 = arith.constant 0.000000e+00 : f32
    %276 = vector.broadcast %cst_95 : f32 to vector<8x64xf32>
    %277 = arith.maximumf %275, %276 : vector<8x64xf32>
    %c0_96 = arith.constant 0 : index
    %c0_97 = arith.constant 0 : index
    %278 = vector.load %arg11[%c0_96, %c0_97] : memref<64x32xf32, #tpu.memory_space<vmem>>, vector<64x32xf32>
    %cst_98 = arith.constant dense<0.000000e+00> : vector<8x32xf32>
    %279 = tpu.matmul %277, %278, %cst_98 {dimension_numbers = #tpu.dot_dimension_numbers<[1], [0], [0], [1], [0, 0, 1, 1], [], []>} : vector<8x64xf32>, vector<64x32xf32>, vector<8x32xf32> -> vector<8x32xf32>
    %c0_99 = arith.constant 0 : index
    %c0_100 = arith.constant 0 : index
    %280 = vector.load %arg12[%c0_99, %c0_100] : memref<1x32xf32, #tpu.memory_space<vmem>>, vector<1x32xf32>
    %281 = vector.broadcast %280 : vector<1x32xf32> to vector<8x32xf32>
    %282 = arith.addf %279, %281 : vector<8x32xf32>
    %283 = arith.addf %270, %282 : vector<8x32xf32>
    %284 = vector.extract_strided_slice %12 {offsets = [2, 0], sizes = [1, 32], strides = [1, 1]} : vector<3x32xf32> to vector<1x32xf32>
    %285 = vector.extract_strided_slice %13 {offsets = [2, 0], sizes = [1, 32], strides = [1, 1]} : vector<3x32xf32> to vector<1x32xf32>
    %cst_101 = arith.constant dense<0.000000e+00> : vector<8xf32>
    %286 = vector.multi_reduction <add>, %283, %cst_101 [1] : vector<8x32xf32> to vector<8xf32>
    %287 = vector.shape_cast %286 : vector<8xf32> to vector<8x1xf32>
    %cst_102 = arith.constant 3.200000e+01 : f32
    %288 = vector.broadcast %cst_102 : f32 to vector<8x1xf32>
    %289 = arith.divf %287, %288 : vector<8x1xf32>
    %290 = vector.broadcast %289 : vector<8x1xf32> to vector<8x32xf32>
    %291 = arith.subf %283, %290 : vector<8x32xf32>
    %292 = arith.mulf %291, %291 : vector<8x32xf32>
    %cst_103 = arith.constant dense<0.000000e+00> : vector<8xf32>
    %293 = vector.multi_reduction <add>, %292, %cst_103 [1] : vector<8x32xf32> to vector<8xf32>
    %294 = vector.shape_cast %293 : vector<8xf32> to vector<8x1xf32>
    %cst_104 = arith.constant 3.200000e+01 : f32
    %295 = vector.broadcast %cst_104 : f32 to vector<8x1xf32>
    %296 = arith.divf %294, %295 : vector<8x1xf32>
    %cst_105 = arith.constant 9.99999974E-6 : f32
    %297 = vector.broadcast %cst_105 : f32 to vector<8x1xf32>
    %298 = arith.addf %296, %297 : vector<8x1xf32>
    %299 = math.rsqrt %298 : vector<8x1xf32>
    %300 = vector.broadcast %299 : vector<8x1xf32> to vector<8x32xf32>
    %301 = arith.mulf %291, %300 : vector<8x32xf32>
    %302 = vector.broadcast %284 : vector<1x32xf32> to vector<8x32xf32>
    %303 = arith.mulf %301, %302 : vector<8x32xf32>
    %304 = vector.broadcast %285 : vector<1x32xf32> to vector<8x32xf32>
    %305 = arith.addf %303, %304 : vector<8x32xf32>
    %c0_106 = arith.constant 0 : index
    %c0_107 = arith.constant 0 : index
    %c0_108 = arith.constant 0 : index
    %306 = vector.load %arg15[%c0_106, %c0_107, %c0_108] : memref<1x8x32xf32, #tpu.memory_space<vmem>>, vector<1x8x32xf32>
    %307 = vector.shape_cast %306 : vector<1x8x32xf32> to vector<8x32xf32>
    %308 = vector.shape_cast %305 : vector<8x32xf32> to vector<1x8x32xf32>
    tpu.vector_store %arg15[%c0_106, %c0_107, %c0_108], %308 {strides = array<i32>} : memref<1x8x32xf32, #tpu.memory_space<vmem>>, vector<1x8x32xf32>,
    return
  }
  func.func @transform_0(%arg0: i32) -> (i32, i32, i32) {
    %c0_i32 = arith.constant 0 : i32
    %c0_i32_0 = arith.constant 0 : i32
    %c0_i32_1 = arith.constant 0 : i32
    return %arg0, %c0_i32, %c0_i32_0 : i32, i32, i32
  }
  func.func @transform_1(%arg0: i32) -> (i32, i32, i32) {
    %c0_i32 = arith.constant 0 : i32
    %c0_i32_0 = arith.constant 0 : i32
    %c0_i32_1 = arith.constant 0 : i32
    return %arg0, %c0_i32, %c0_i32_0 : i32, i32, i32
  }
  func.func @transform_2(%arg0: i32) -> (i32, i32, i32) {
    %c0_i32 = arith.constant 0 : i32
    %c0_i32_0 = arith.constant 0 : i32
    %c0_i32_1 = arith.constant 0 : i32
    return %arg0, %c0_i32, %c0_i32_0 : i32, i32, i32
  }
  func.func @transform_3(%arg0: i32) -> (i32, i32, i32) {
    %c0_i32 = arith.constant 0 : i32
    %c0_i32_0 = arith.constant 0 : i32
    %c0_i32_1 = arith.constant 0 : i32
    return %arg0, %c0_i32, %c0_i32_0 : i32, i32, i32
  }
  func.func @transform_4(%arg0: i32) -> (i32, i32, i32) {
    %c0_i32 = arith.constant 0 : i32
    %c0_i32_0 = arith.constant 0 : i32
    %c0_i32_1 = arith.constant 0 : i32
    %c0_i32_2 = arith.constant 0 : i32
    return %c0_i32, %c0_i32_0, %c0_i32_1 : i32, i32, i32
  }
  func.func @transform_5(%arg0: i32) -> (i32, i32) {
    %c0_i32 = arith.constant 0 : i32
    %c0_i32_0 = arith.constant 0 : i32
    %c0_i32_1 = arith.constant 0 : i32
    return %c0_i32, %c0_i32_0 : i32, i32
  }
  func.func @transform_6(%arg0: i32) -> (i32, i32, i32) {
    %c0_i32 = arith.constant 0 : i32
    %c0_i32_0 = arith.constant 0 : i32
    %c0_i32_1 = arith.constant 0 : i32
    %c0_i32_2 = arith.constant 0 : i32
    return %c0_i32, %c0_i32_0, %c0_i32_1 : i32, i32, i32
  }
  func.func @transform_7(%arg0: i32) -> (i32, i32) {
    %c0_i32 = arith.constant 0 : i32
    %c0_i32_0 = arith.constant 0 : i32
    %c0_i32_1 = arith.constant 0 : i32
    return %c0_i32, %c0_i32_0 : i32, i32
  }
  func.func @transform_8(%arg0: i32) -> (i32, i32) {
    %c0_i32 = arith.constant 0 : i32
    %c0_i32_0 = arith.constant 0 : i32
    %c0_i32_1 = arith.constant 0 : i32
    return %c0_i32, %c0_i32_0 : i32, i32
  }
  func.func @transform_9(%arg0: i32) -> (i32, i32) {
    %c0_i32 = arith.constant 0 : i32
    %c0_i32_0 = arith.constant 0 : i32
    %c0_i32_1 = arith.constant 0 : i32
    return %c0_i32, %c0_i32_0 : i32, i32
  }
  func.func @transform_10(%arg0: i32) -> (i32, i32) {
    %c0_i32 = arith.constant 0 : i32
    %c0_i32_0 = arith.constant 0 : i32
    %c0_i32_1 = arith.constant 0 : i32
    return %c0_i32, %c0_i32_0 : i32, i32
  }
  func.func @transform_11(%arg0: i32) -> (i32, i32) {
    %c0_i32 = arith.constant 0 : i32
    %c0_i32_0 = arith.constant 0 : i32
    %c0_i32_1 = arith.constant 0 : i32
    return %c0_i32, %c0_i32_0 : i32, i32
  }
  func.func @transform_12(%arg0: i32) -> (i32, i32) {
    %c0_i32 = arith.constant 0 : i32
    %c0_i32_0 = arith.constant 0 : i32
    %c0_i32_1 = arith.constant 0 : i32
    return %c0_i32, %c0_i32_0 : i32, i32
  }
  func.func @transform_13(%arg0: i32) -> (i32, i32) {
    %c0_i32 = arith.constant 0 : i32
    %c0_i32_0 = arith.constant 0 : i32
    %c0_i32_1 = arith.constant 0 : i32
    return %c0_i32, %c0_i32_0 : i32, i32
  }
  func.func @transform_14(%arg0: i32) -> (i32, i32, i32) {
    %c0_i32 = arith.constant 0 : i32
    %c0_i32_0 = arith.constant 0 : i32
    %c0_i32_1 = arith.constant 0 : i32
    return %arg0, %c0_i32, %c0_i32_0 : i32, i32, i32
  }
}

</mosaic_0001>

<bundles_post_ra>
// kernel: tpu_custom_call.1
= control target key start
LH: loop header
LB: loop body
LE: loop exit
PB: predicated region body
PF: predicated region fallthrough
CT: control target
= control target key end

     0   :  { %s3054_s0 = inlined_call_operand.hbm [shape: f32[2,8,32], index: 0, kind: input, shape index: {}]   ;;  %s3055_s1 = inlined_call_operand.vmem [shape: f32[2,16,32], index: 1, kind: input, shape index: {}]   ;;  %s3056_s2 = inlined_call_operand.hbm [shape: f32[2,8,32], index: 2, kind: input, shape index: {}]   ;;  %s3057_s3 = inlined_call_operand.vmem [shape: f32[2,16,32], index: 3, kind: input, shape index: {}]   ;;  %s3058_s4 = inlined_call_operand.hbm [shape: f32[4,32,32], index: 4, kind: input, shape index: {}]   ;;  %s3059_s5 = inlined_call_operand.hbm [shape: f32[4,32], index: 5, kind: input, shape index: {}]   ;;  %s3060_s6 = inlined_call_operand.hbm [shape: f32[4,32,32], index: 6, kind: input, shape index: {}]   ;;  %s3061_s7 = inlined_call_operand.vmem [shape: f32[4,32], index: 7, kind: input, shape index: {}]   ;;  %s3062_s8 = inlined_call_operand.vmem [shape: f32[32,64], index: 8, kind: input, shape index: {}]   ;;  %s3063_s9 = inlined_call_operand.vmem [shape: f32[1,64], index: 9, kind: input, shape index: {}]   ;;  %s3064_s10 = inlined_call_operand.vmem [shape: f32[64,32], index: 10, kind: input, shape index: {}]   ;;  %s3065_s11 = inlined_call_operand.hbm [shape: f32[1,32], index: 11, kind: input, shape index: {}]   ;;  %s3066_s12 = inlined_call_operand.vmem [shape: f32[3,32], index: 12, kind: input, shape index: {}]   ;;  %s3067_s13 = inlined_call_operand.hbm [shape: f32[3,32], index: 13, kind: input, shape index: {}]   ;;  %s3068_s14 = inlined_call_operand.hbm [shape: f32[2,8,32], index: 14, kind: output, shape index: {}]  }
   0x1   :  { %3076 = sst [smem:[#allocation26_spill]] %s3058_s4 }
   0x2   :  { %3077 = sst [smem:[#allocation27_spill]] %s3059_s5 }
   0x3   :  { %3078 = sst [smem:[#allocation28_spill]] %s3060_s6 }
   0x4   :  { %3079 = sst [smem:[#allocation29_spill]] %s3063_s9 }
   0x5   :  { %3080 = sst [smem:[#allocation30_spill]] %s3064_s10 }
   0x6   :  { %3081 = sst [smem:[#allocation31_spill]] %s3065_s11 }
   0x7   :  { %3082 = sst [smem:[#allocation32_spill]] %s3067_s13 }
   0x8   :  { %3083 = sst [smem:[#allocation33_spill]] %s3068_s14 }
   0x9   :  { %19 = vsyncpa [#allocation3], 0 }
   0xa   :  { %21 = vsyncpa [#allocation3 + $0x1], 0 }
   0xb   :  { %22 = vsyncpa [#allocation6], 0 }
   0xc   :  { %24 = vsyncpa [#allocation6 + $0x1], 0 }
   0xd   :  { %25 = vsyncpa [#allocation9], 0 }
   0xe   :  { %26 = vsyncpa [#allocation12], 0 }
   0xf   :  { %27 = vsyncpa [#allocation4], 0 }
  0x10   :  { %29 = vsyncpa [#allocation4 + $0x1], 0  ;;  %s2636_s29 = smov 0   ;;  %s2638_s30 = smov 0  }
  0x11   :  { %s2640_s15 = smov 0   ;;  %s2642_s16 = smov 0  }
  0x12 LB: > { %3084 = sst [smem:[#allocation21_spill]] %s2544_s15  ;;  %s2660_s20 = sadd.s32 4294967295, %s2548_s16   ;;  %s2548_s16 = sphi %s2642_s16, %s3107_s16   ;;  %s2544_s15 = sphi %s2640_s15, %s3109_s15   ;;  %s2540_s30 = sphi %s2638_s30, %s3111_s30   ;;  %s2536_s29 = sphi %s2636_s29, %s3110_s29  }
  0x13   : > { %3085 = sst [smem:[#allocation22_spill]] %s2548_s16  ;;  %p2015_p0 = scmp.ge.s32.totalorder %s2548_s16, 1 }
  0x14   : > { %s3086_s4 = sld [smem:[#allocation26_spill]]  ;;  %p56_p1 = scmp.eq.s32.totalorder %s2660_s20, 0 }
  0x15   : > { %p380_p2 = scmp.lt.s32.totalorder %s2548_s16, 3  ;;  %s2550_s22 = smov [#allocation7]  }
  0x16   : > { %s393_s23 = sshll.u32 %s2550_s22, 4  ;;  %s3088_s5 = sld [smem:[#allocation27_spill]]  ;;  %s394_s23 = int_to_ptr.vmem [resolvable:$true] %s393_s23 }
  0x17   : > { %p2665_p3 = pnand %p2015_p0, %p380_p2  ;;  %s3090_s11 = sld [smem:[#allocation31_spill]] }
  0x18   : > { %s2551_s22 = smov [#allocation8]   ;;  %s2552_s14 = smov 128  }
  0x19   : > { %p2117_p4 = pneg %p2665_p3  ;;  %s2553_s9 = smov 8  }
  0x1a   : > { %s391_s19 = sshll.u32 %s3086_s4, 4  ;;  %s408_s4 = sshll.u32 %s2551_s22, 4  ;;  %s392_s19 = int_to_ptr.hbm [resolvable:$true] %s391_s19  ;;  %s409_s4 = int_to_ptr.vmem [resolvable:$true] %s408_s4 }
  0x1b   : > { %p2677_p6 = pnand %p2117_p4, %p56_p1  ;;  %s3091_s6 = sld [smem:[#allocation28_spill]] }
  0x1c   : > { %s406_s26 = sshll.u32 %s3088_s5, 4  ;;  %s2554_s10 = smov [#allocation11]   ;;  %s407_s26 = int_to_ptr.hbm [resolvable:$true] %s406_s26 }
  0x1d   : > { %s444_s18 = sshll.u32 %s3090_s11, 4  ;;  %s446_s28 = sshll.u32 %s2554_s10, 4  ;;  %s445_s18 = int_to_ptr.hbm [resolvable:$true] %s444_s18  ;;  %s447_s28 = int_to_ptr.vmem [resolvable:$true] %s446_s28 }
  0x1e   : > { %2120 = dma.hbm_to_vmem [thread:$0]  (!%p2677_p6), %s392_s19, 2048, %s394_s23, [#allocation6], %s2552_s14, %s2552_s14, %s2553_s9  }
  0x1f   : > { %2123 = dma.hbm_to_vmem [thread:$0]  (!%p2677_p6), %s407_s26, 64, %s409_s4, [#allocation9]  }
  0x20   : > { %2129 = dma.hbm_to_vmem [thread:$0]  (!%p2677_p6), %s445_s18, 16, %s447_s28, [#allocation12]  }
  0x21   : > { %s417_s5 = sshll.u32 %s3091_s6, 4  ;;  %s2555_s19 = smov [#allocation10]   ;;  %s418_s5 = int_to_ptr.hbm [resolvable:$true] %s417_s5 }
  0x22   : > { %s419_s4 = sshll.u32 %s2555_s19, 4  ;;  %s3092_s13 = sld [smem:[#allocation32_spill]]  ;;  %s420_s4 = int_to_ptr.vmem [resolvable:$true] %s419_s4 }
  0x23   : > { %2126 = dma.hbm_to_vmem [thread:$0]  (!%p2677_p6), %s418_s5, 2048, %s420_s4, [#allocation9], %s2552_s14, %s2552_s14, %s2553_s9  }
  0x24   : > { %s2556_s10 = smov [#allocation13]   ;;  %s2014_s18 = sadd.s32 4294967294, %s2548_s16  }
  0x25   : > { %s461_s22 = sshll.u32 %s2556_s10, 4  ;;  %s2702_s24 = sadd.s32 1, %s2548_s16   ;;  %s462_s22 = int_to_ptr.vmem [resolvable:$true] %s461_s22 }
  0x26   : > { %3093 = sst [smem:[#allocation23_spill]] %s2702_s24  ;;  %s42_s25 = sadd.s32 1, %s2544_s15 }
  0x27   : > { %s39_s28 = ssub.s32 %s2548_s16, %s2702_s24  ;;  %p49_p7 = scmp.ne.s32.totalorder %s2544_s15, %s2540_s30 }
  0x28   : > { %s459_s17 = sshll.u32 %s3092_s13, 4  ;;  %p40_p8 = scmp.eq.s32.totalorder %s39_s28, 0  ;;  %s460_s17 = int_to_ptr.hbm [resolvable:$true] %s459_s17 }
  0x29   : > { %2132 = dma.hbm_to_vmem [thread:$0]  (!%p2677_p6), %s460_s17, 64, %s462_s22, [#allocation12]  }
  0x2a   : > { %p50_p9 = scmp.eq.s32.totalorder %s2548_s16, 0  ;;  %p55_p10 = scmp.ne.s32.totalorder %s2540_s30, %s2536_s29 }
  0x2b   : > { %p367_p11 = scmp.eq.s32.totalorder %s2660_s20, 1  ;;  %p373_p2 = scmp.eq.s32.totalorder %s2014_s18, 1 }
  0x2c   : > { %s2714_s5 = scalar_select %p40_p8, %s2544_s15, %s42_s25  }
  0x2d   : > { %p2716_p12 = por %p50_p9, %p49_p7  ;;  %p2722_p13 = por %p56_p1, %p55_p10 }
  0x2e   : > { %3094 = sst [smem:[#allocation24_spill]] %s2714_s5  ;;  %p2726_p0 = por %p367_p11, %p49_p7 }
  0x2f   : > { %p2149_p4 = scmp.lt.s32.totalorder %s2548_s16, 2  ;;  %s472_s19 = sand.u32 1, %s2544_s15  }
  0x30   : > { %p2732_p6 = por %p373_p2, %p55_p10  ;;  %s2022_s23 = sshll.u32 %s472_s19, 3 }
  0x31   : > { %s2023_s26 = sshll.u32 %s2548_s16, 3  ;;  %s476_s28 = scalar_lea.vmem [#allocation2], %s2022_s23 }
  0x32   : > { %s3098_s4 = scalar_select %p2732_p6, 1, 0 }
  0x33   : > { %s480_s22 = scalar_lea.hbm %s3054_s0, %s2023_s26  ;;  %s484_s6 = sshll.u32 %s476_s28, 4  ;;  %s485_s6 = int_to_ptr.vmem [resolvable:$true] %s484_s6 }
  0x34   : > { %3099 = sst [smem:[#allocation25_spill]] %s3098_s4  ;;  %s482_s25 = sshll.u32 %s480_s22, 4  ;;  %s483_s25 = int_to_ptr.hbm [resolvable:$true] %s482_s25 }
  0x35   : > { %p2742_p7 = pnand %p2149_p4, %p2716_p12  ;;  %s507_s5 = scalar_lea.hbm %s3056_s2, %s2023_s26 }
  0x36   : > { %s499_s15 = sand.u32 1, %s2548_s16   ;;  %s473_s24 = scalar_lea.sflag [#allocation3], %s472_s19 }
  0x37   : > { %s2406_s17 = sshra.s32 %s483_s25, 4  ;;  %p2410_p9 = pneg %p2742_p7  ;;  %s2407_s17 = int_to_ptr.hbm [resolvable:$true] %s2406_s17 }
  0x38   : > { %s2408_s10 = scalar_lea.hbm %s2407_s17, 8  ;;  %s2413_s28 = scalar_lea.hbm %s3054_s0, 16 }
  0x39   : > { %p2409_p8 = scmp.ne.s32.totalorder %s2407_s17, %s2408_s10  ;;  %p2414_p12 = scmp.lt.s32.totalorder %s2407_s17, %s3054_s0 }
  0x3a   : > { %p2415_p2 = scmp.lt.s32.totalorder %s2413_s28, %s2408_s10 }
  0x3b   : > { %p2411_p10 = pnand %p2410_p9, %p2409_p8 }
  0x3c   : > { %p2416_p4 = por %p2415_p2, %p2414_p12 }
  0x3d   : > { %p2412_p11 = pneg %p2411_p10 }
  0x3f   : > { %p2417_p5 = pnand %p2416_p4, %p2412_p11 }
  0x41   : > { %2420 = shalt.err (!%p2417_p5)
}
  0x42   : > { %2136 = dma.hbm_to_vmem [thread:$0]  (!%p2742_p7), %s483_s25, 128, %s485_s6, %s473_s24  }
  0x43   : > { %s509_s19 = sshll.u32 %s507_s5, 4  ;;  %s503_s26 = scalar_lea.vmem [#allocation5], %s2022_s23  ;;  %s510_s19 = int_to_ptr.hbm [resolvable:$true] %s509_s19 }
  0x44   : > { %s511_s16 = sshll.u32 %s503_s26, 4  ;;  %s500_s4 = scalar_lea.sflag [#allocation6], %s499_s15  ;;  %s512_s16 = int_to_ptr.vmem [resolvable:$true] %s511_s16 }
  0x45   : > { %s2436_s9 = sshra.s32 %s510_s19, 4  ;;  %s2443_s28 = scalar_lea.hbm %s3056_s2, 16  ;;  %s2437_s9 = int_to_ptr.hbm [resolvable:$true] %s2436_s9 }
  0x46   : > { %s2438_s22 = scalar_lea.hbm %s2437_s9, 8  ;;  %p2444_p5 = scmp.lt.s32.totalorder %s2437_s9, %s3056_s2 }
  0x47   : > { %p2439_p8 = scmp.ne.s32.totalorder %s2437_s9, %s2438_s22  ;;  %p2445_p11 = scmp.lt.s32.totalorder %s2443_s28, %s2438_s22 }
  0x49   : > { %p2441_p10 = pnand %p2439_p8, %p2410_p9  ;;  %p2446_p2 = por %p2445_p11, %p2444_p5 }
  0x4b   : > { %p2442_p12 = pneg %p2441_p10 }
  0x4d   : > { %p2447_p4 = pnand %p2446_p2, %p2442_p12 }
  0x4f   : > { %2450 = shalt.err (!%p2447_p4)
}
  0x50   : > { %2139 = dma.hbm_to_vmem [thread:$0]  (!%p2742_p7), %s510_s19, 128, %s512_s16, %s500_s4  }
  0x51   : > { %528 = sbr.rel (%p2665_p3) target bundleno = 3848 (0xf08), region = 76  ;;  %s2777_s15 = sand.u32 (!%p2665_p3), 1, %s2540_s30  }
  0x52   : > { %s2780_s24 = sshll.u32 (!%p2665_p3), %s2777_s15, 3  ;;  %s531_s5 = scalar_lea.sflag (!%p2665_p3), [#allocation3], %s2777_s15 }
  0x53   : > { %s534_s23 = scalar_lea.vmem (!%p2665_p3), [#allocation2], %s2780_s24 }
  0x56   : > { %2511 = dma.done.wait (%p2722_p13), %s531_s5, 128  }
  0x57   : > { %2513 = vsyncadd (%p2722_p13), %s531_s5, 4294967168  ;;  %s540_s16 = sand.u32 1, %s2660_s20   ;;  %s544_s4 = scalar_lea.vmem [#allocation5], %s2780_s24 }
  0x58   : > { %s541_s21 = scalar_lea.sflag [#allocation6], %s540_s16 }
  0x59   : > { %2515 = dma.done.wait (%p2722_p13), %s541_s21, 128  }
  0x5a   : > { %2517 = vsyncadd (%p2722_p13), %s541_s21, 4294967168 }
  0x5b   : > { %2519 = dma.done.wait (%p56_p1), [#allocation6], 2048  }
  0x5c   : > { %2521 = vsyncadd (%p56_p1), [#allocation6], 4294965248 }
  0x5d   : > { %2523 = dma.done.wait (%p56_p1), [#allocation9], 2112  }
  0x5e   : > { %2525 = vsyncadd (%p56_p1), [#allocation9], 4294965184 }
  0x5f   : > { %2527 = dma.done.wait (%p56_p1), [#allocation12], 80  }
  0x60   : > { %2529 = vsyncadd (%p56_p1), [#allocation12], 4294967216  ;;  %v649_v0 = vld [vmem:[#allocation7 + $0x18] sm:$0xff]  ;;  %v648_v1 = vld [vmem:[#allocation7 + $0x10] sm:$0xff]  ;;  %vm684_vm0 = vcmask 261120   ;;  %vm754_vm1 = vcmask 64512  }
  0x61   : > { %700 = vmatpush.msra.mxu1 %v649_v0  ;;  %v2806_v2 = vld [vmem:[%s534_s23] sm:$0xff]  ;;  %v2808_v3 = vld [vmem:[%s544_s4] sm:$0xff]  ;;  %s2557_s14 = smov 112   ;;  %s2558_s25 = smov 120  }
  0x62   : > { %v647_v4 = vld [vmem:[#allocation7 + $0x8] sm:$0xff]  ;;  %v646_v5 = vld [vmem:[#allocation7] sm:$0xff]  ;;  %v682_v6 = vadd.f32 %v2808_v3, %v2806_v2  ;;  %v653_v7 = vld [vmem:[#allocation7 + $0x38] sm:$0xff]  ;;  %s2559_s18 = smov 104   ;;  %p630_p1 = scmp.lt.s32.totalorder %s2660_s20, 1 }
  0x63   : > { %701 = vmatpush.msra.mxu1 %v648_v1  ;;  %v652_v8 = vld [vmem:[#allocation7 + $0x30] sm:$0xff]  ;;  %v651_v9 = vld [vmem:[#allocation7 + $0x28] sm:$0xff]  ;;  %v650_v10 = vld [vmem:[#allocation7 + $0x20] sm:$0xff]  ;;  %s3102_s9 = sld [smem:[#allocation29_spill]]  ;;  %s2086_s17 = sshll.u32 %s2660_s20, 3 }
  0x64   : > { %v2814_v12 = vld [vmem:[#allocation8] sm:$0xf]  ;;  %v657_v24 = vld [vmem:[#allocation7 + $0x58] sm:$0xff]  ;;  %v656_v25 = vld [vmem:[#allocation7 + $0x50] sm:$0xff]  ;;  %s631_s13 = scalar_select %p630_p1, %s2660_s20, 1 }
  0x65   : > { %702 = vmatpush.msra.mxu1 %v647_v4  ;;  %v683_v13 = vperm.slane %v2814_v12, 0  ;;  %v708_v14 = vperm.slane %v2814_v12, 1  ;;  %745 = vmatpush.msra.mxu2 %v657_v24  ;;  %v655_v26 = vld [vmem:[#allocation7 + $0x48] sm:$0xff]  ;;  %v654_v27 = vld [vmem:[#allocation7 + $0x40] sm:$0xff]  ;;  %v729_v36 = vperm.slane %v2814_v12, 2  ;;  %s3103_s11 = sld [smem:[#allocation33_spill]] }
  0x66   : > { %v658_v39 = vld [vmem:[#allocation7 + $0x60] sm:$0xff]  ;;  %s2089_s19 = sshll.u32 %s631_s13, 4  ;;  %s629_s5 = scalar_lea.vmem [#allocation14], %s2780_s24 }
  0x67   : > { %703 = vmatpush.msra.mxu1 %v646_v5  ;;  %746 = vmatpush.msra.mxu2 %v656_v25  ;;  %s634_s22 = scalar_lea.vmem %s3055_s1, %s2089_s19  ;;  %s639_s28 = scalar_lea.vmem %s3057_s3, %s2089_s19 }
  0x68   : > { %2039 = vmatmul.msk.f32.vlgmr.msra.gmra.mxu1 %vm684_vm0, %v682_v6  ;;  %s1847_s23 = sshll.u32 %s629_s5, 4  ;;  %s1835_s20 = scalar_lea.sflag [#allocation4], %s2777_s15  ;;  %s1848_s23 = int_to_ptr.vmem [resolvable:$true] %s1847_s23 }
  0x69   : > { %721 = vmatpush.msrb.mxu1 %v653_v7  ;;  %747 = vmatpush.msra.mxu2 %v655_v26 }
  0x6b   : > { %722 = vmatpush.msrb.mxu1 %v652_v8  ;;  %748 = vmatpush.msra.mxu2 %v654_v27  ;;  %s1845_s6 = scalar_lea.hbm %s3103_s11, %s2086_s17  ;;  %s2486_s24 = scalar_lea.hbm %s3103_s11, 16 }
  0x6c   : > { %2041 = vmatmul.msk.f32.vlgmr.msra.gmra.mxu2 %vm684_vm0, %v2806_v2  ;;  %s1849_s16 = sshll.u32 %s1845_s6, 4  ;;  %s1850_s16 = int_to_ptr.hbm [resolvable:$true] %s1849_s16 }
  0x6d   : > { %723 = vmatpush.msrb.mxu1 %v651_v9  ;;  %s2480_s21 = sshra.s32 %s1850_s16, 4  ;;  %s2481_s21 = int_to_ptr.hbm [resolvable:$true] %s2480_s21 }
  0x6e   : > { %s2482_s4 = scalar_lea.hbm %s2481_s21, 8  ;;  %p2487_p9 = scmp.lt.s32.totalorder %s2481_s21, %s3103_s11 }
  0x6f   : > { %724 = vmatpush.msrb.mxu1 %v650_v10  ;;  %p2483_p3 = scmp.ne.s32.totalorder %s2481_s21, %s2482_s4  ;;  %p2488_p8 = scmp.lt.s32.totalorder %s2486_s24, %s2482_s4 }
  0x70   : > { %2040 = vmatmul.msk.f32.vlgmr.msrb.gmra.mxu1 %vm684_vm0, %v682_v6 }
  0x71   : > { %p2484_p13 = pnand %p2483_p3, %p2726_p0  ;;  %p2489_p10 = por %p2488_p8, %p2487_p9 }
  0x73   : > { %p2485_p7 = pneg %p2484_p13 }
  0x75   : > { %p2490_p12 = pnand %p2489_p10, %p2485_p7 }
  0xe5   : > { %v705_v11 = vpop.f32.mrf.mxu1 }
  0xe6   : > { %v706_v16 = vadd.f32 %v705_v11, %v683_v13 }
  0xe8   : > { %v753_v18 = vmul.f32 0.35355338, %v706_v16 }
  0xed   : > { %v726_v15 = vpop.f32.mrf.mxu1 }
  0xee   : > { %v727_v17 = vadd.f32 %v726_v15, %v708_v14 }
  0xef   : > { %v750_v37 = vpop.f32.mrf.mxu2 }
  0xf0   : > { %955 = vrot.lane.b32.xlu2 %v727_v17, %s2557_s14  ;;  %830 = vrot.lane.b32.xlu1 %v727_v17, %s2558_s25  ;;  %v2835_v38 = vadd.f32 %v750_v37, %v729_v36 }
  0xf1   : > { %2042 = vmatpush.xpose.msk.msra.mxu3 %vm754_vm1, %v727_v17 }
  0xf4   : > { %2043 = vmatmul.msk.f32.vlgmr.msra.gmra.mxu3 %vm754_vm1, %v753_v18 }
  0xf5   : > { %823 = vmatpush.msrb.mxu3 %v2835_v38 }
  0xf7   : > { %948 = vmatpush.msra.mxu3 %v658_v39 }
  0xf8   : > { %1057 = vrot.lane.b32.xlu2 %v727_v17, %s2559_s18  ;;  %828 = vrot.lane.b32.xlu1 %v753_v18, %s2558_s25 }
 0x100   : > { %1055 = vrot.lane.b32.xlu1 %v753_v18, %s2559_s18 }
 0x14a   : > { %v956_v20 = vpop.permute.xlu2 %955 }
 0x152   : > { %v1058_v35 = vpop.permute.xlu2 %1057 }
 0x162   : > { %v831_v19 = vpop.permute.xlu1 %830 }
 0x163   : > { %2045 = vmatpush.xpose.msk.msra.mxu0 %vm754_vm1, %v831_v19 }
 0x167   : > { %2050 = vmatpush.xpose.msk.msrb.mxu0 %vm754_vm1, %v956_v20 }
 0x16a   : > { %v829_v21 = vpop.permute.xlu1 %828 }
 0x16b   : > { %2046 = vmatmul.msk.f32.vlgmr.msra.gmra.mxu0 %vm754_vm1, %v829_v21 }
 0x172   : > { %v1056_v61 = vpop.permute.xlu1 %1055 }
 0x177   : > { %v778_v22 = vpop.f32.mrf.mxu3 }
 0x178   : > { %v781_v23 = vsel %vm754_vm1, %v778_v22, -inf }
 0x179   : > { %782 = vmax.xlane.f32.xlu0 %v781_v23 }
 0x1e8   : > { %v853_v28 = vpop.f32.mrf.mxu0 }
 0x1e9   : > { %v856_v29 = vsel %vm754_vm1, %v853_v28, -inf }
 0x1ea   : > { %857 = vmax.xlane.f32.xlu2 %v856_v29  ;;  %v659_v29 = vld [vmem:[#allocation7 + $0x68] sm:$0xff] }
 0x1eb   : > { %925 = vmatpush.msrb.mxu2 %v659_v29  ;;  %v665_v29 = vld [vmem:[#allocation10 + $0x10] sm:$0xff] }
 0x1ec   : > { %v783_v30 = vpop.xlane.xlu0 %782 }
 0x1ed   : > { %v784_v31 = vsub.f32 %v778_v22, %v783_v30 }
 0x1ef   : > { %v785_v32 = vmul.f32 1.442695, %v784_v31 }
 0x1f1   : > { %2216 = vpow2.f32 %v785_v32 }
 0x1f7   : > { %v2217_v33 = vpop.eup %2216 }
 0x1f8   : > { %v787_v34 = vsel %vm754_vm1, %v2217_v33, 0.0 }
 0x1f9   : > { %788 = vadd.xlane.f32.xlu0 %v787_v34 }
 0x20d   : > { %953 = vrot.lane.b32.xlu0 %v753_v18, %s2557_s14 }
 0x25d   : > { %v858_v40 = vpop.xlane.xlu2 %857 }
 0x25e   : > { %v859_v41 = vsub.f32 %v853_v28, %v858_v40 }
 0x260   : > { %v860_v42 = vmul.f32 1.442695, %v859_v41 }
 0x262   : > { %2218 = vpow2.f32 %v860_v42 }
 0x268   : > { %v2219_v43 = vpop.eup %2218 }
 0x269   : > { %v862_v44 = vsel %vm754_vm1, %v2219_v43, 0.0 }
 0x26a   : > { %863 = vadd.xlane.f32.xlu2 %v862_v44 }
 0x26c   : > { %v789_v45 = vpop.xlane.xlu0 %788 }
 0x26d   : > { %2220 = vrcp.f32 %v789_v45  ;;  %v801_v49 = vand.u32 2147483648, %v789_v45  ;;  %v799_v51 = vand.u32 2147483647, %v789_v45  ;;  %vm795_vm3 = vweird.f32 %v789_v45 }
 0x26f   : > { %v802_v53 = vor.u32 1.1754944e-38, %v801_v49  ;;  %vm800_vm5 = vcmp.eq.f32.partialorder %v799_v51, 8.507059e+37 }
 0x273   : > { %v2221_v46 = vpop.eup %2220 }
 0x274   : > { %v791_v47 = vmul.f32 %v2221_v46, %v789_v45  ;;  %vm796_vm2 = vweird.f32 %v2221_v46 }
 0x275   : > { %vm797_vm4 = vmor %vm795_vm3, %vm796_vm2 }
 0x276   : > { %v792_v48 = vsub.f32 1.0, %v791_v47 }
 0x278   : > { %v793_v50 = vmul.f32 %v2221_v46, %v792_v48 }
 0x27a   : > { %v794_v52 = vadd.f32 %v2221_v46, %v793_v50 }
 0x27c   : > { %v798_v54 = vsel %vm797_vm4, %v2221_v46, %v794_v52 }
 0x27d   : > { %v803_v55 = vsel %vm800_vm5, %v802_v53, %v798_v54 }
 0x27e   : > { %v804_v56 = vmul.f32 %v2217_v33, %v803_v55  ;;  %v661_v55 = vld [vmem:[#allocation7 + $0x78] sm:$0xff] }
 0x27f   : > { %v954_v57 = vpop.permute.xlu0 %953 }
 0x280   : > { %2044 = vmatmul.msk.f32.vlgmr.msrb.gmra.mxu3 %vm754_vm1, %v804_v56  ;;  %2051 = vmatmul.msk.f32.vlgmr.msrb.gmra.mxu0 %vm754_vm1, %v954_v57  ;;  %v660_v56 = vld [vmem:[#allocation7 + $0x70] sm:$0xff] }
 0x281   : > { %2054 = vmatpush.xpose.msk.msrb.mxu3 %vm754_vm1, %v1058_v35  ;;  %1049 = vmatpush.msra.mxu2 %v660_v56 }
 0x2dd   : > { %v864_v8 = vpop.xlane.xlu2 %863 }
 0x2de   : > { %v876_v15 = vand.u32 2147483648, %v864_v8  ;;  %vm870_vm7 = vweird.f32 %v864_v8  ;;  %v874_v16 = vand.u32 2147483647, %v864_v8 }
 0x2e0   : > { %v877_v19 = vor.u32 1.1754944e-38, %v876_v15  ;;  %vm875_vm9 = vcmp.eq.f32.partialorder %v874_v16, 8.507059e+37 }
 0x2fd   : > { %v978_v58 = vpop.f32.mrf.mxu0 }
 0x2fe   : > { %v981_v59 = vsel %vm754_vm1, %v978_v58, -inf }
 0x2ff   : > { %982 = vmax.xlane.f32.xlu1 %v981_v59 }
 0x303   : > { %v825_v60 = vpop.f32.mrf.mxu3 }
 0x304   : > { %2049 = vmatmul.msk.f32.vlgmr.msra.gmra.mxu3 %vm754_vm1, %v825_v60 }
 0x30c   : > { %2055 = vmatmul.msk.f32.vlgmr.msrb.gmra.mxu3 %vm754_vm1, %v1056_v61 }
 0x372   : > { %v983_v62 = vpop.xlane.xlu1 %982 }
 0x373   : > { %v984_v63 = vsub.f32 %v978_v58, %v983_v62 }
 0x375   : > { %v985_v0 = vmul.f32 1.442695, %v984_v63  ;;  %v1157_v63 = vperm.slane %v2814_v12, 3 }
 0x377   : > { %2222 = vpow2.f32 %v985_v0 }
 0x378   : > { %2224 = vrcp.f32 %v864_v8 }
 0x37d   : > { %v2845_v1 = vpop.eup %2222 }
 0x37e   : > { %v987_v4 = vsel %vm754_vm1, %v2845_v1, 0.0  ;;  %v2225_v9 = vpop.eup %2224 }
 0x37f   : > { %988 = vadd.xlane.f32.xlu2 %v987_v4  ;;  %v866_v10 = vmul.f32 %v2225_v9, %v864_v8  ;;  %vm871_vm6 = vweird.f32 %v2225_v9  ;;  %v2560_v8 = vmov 32.0  }
 0x380   : > { %vm872_vm8 = vmor %vm870_vm7, %vm871_vm6 }
 0x381   : > { %v867_v11 = vsub.f32 1.0, %v866_v10 }
 0x383   : > { %v868_v13 = vmul.f32 %v2225_v9, %v867_v11 }
 0x385   : > { %v869_v14 = vadd.f32 %v2225_v9, %v868_v13 }
 0x387   : > { %v2849_v5 = vpop.f32.mrf.mxu3  ;;  %v873_v18 = vsel %vm872_vm8, %v2225_v9, %v869_v14  ;;  %vm1310_vm8 = vcmask 130048  }
 0x388   : > { %v878_v20 = vsel %vm875_vm9, %v877_v19, %v873_v18  ;;  %v670_v18 = vld [vmem:[#allocation10 + $0x38] sm:$0xff]  ;;  %v669_v19 = vld [vmem:[#allocation10 + $0x30] sm:$0xff] }
 0x389   : > { %v879_v22 = vmul.f32 %v2219_v43, %v878_v20  ;;  %1239 = vmatpush.msra.mxu3 %v670_v18  ;;  %v668_v20 = vld [vmem:[#allocation10 + $0x28] sm:$0xff]  ;;  %v675_v18 = vld [vmem:[#allocation10 + $0x60] sm:$0xff] }
 0x38b   : > { %1240 = vmatpush.msra.mxu3 %v669_v19 }
 0x38d   : > { %1241 = vmatpush.msra.mxu3 %v668_v20 }
 0x38f   : > { %v1080_v6 = vpop.f32.mrf.mxu3 }
 0x390   : > { %v1083_v7 = vsel %vm754_vm1, %v1080_v6, -inf }
 0x391   : > { %1084 = vmax.xlane.f32.xlu0 %v1083_v7 }
 0x397   : > { %881 = vrot.lane.b32.xlu2 %v2835_v38, %s2558_s25 }
 0x3a5   : > { %1107 = vrot.lane.b32.xlu0 %v2835_v38, %s2559_s18 }
 0x3f2   : > { %v989_v17 = vpop.xlane.xlu2 %988 }
 0x3f3   : > { %v1001_v44 = vand.u32 2147483648, %v989_v17  ;;  %vm995_vm14 = vweird.f32 %v989_v17  ;;  %v999_v46 = vand.u32 2147483647, %v989_v17 }
 0x3f5   : > { %v1002_v51 = vor.u32 1.1754944e-38, %v1001_v44  ;;  %vm1000_vm3 = vcmp.eq.f32.partialorder %v999_v46, 8.507059e+37 }
 0x3fa   : > { %v882_v21 = vpop.permute.xlu2 %881 }
 0x3fb   : > { %902 = vmatpush.msra.mxu1 %v882_v21  ;;  %v2882_v21 = vld [vmem:[%s634_s22] sm:$0xff] }
 0x3fc   : > { %2047 = vmatmul.msk.f32.vlgmr.msra.gmra.mxu1 %vm754_vm1, %v879_v22  ;;  %v644_v22 = vld [vmem:[%s639_s28] sm:$0xff] }
 0x404   : > { %v1085_v23 = vpop.xlane.xlu0 %1084 }
 0x405   : > { %v1086_v24 = vsub.f32 %v1080_v6, %v1085_v23  ;;  %v667_v23 = vld [vmem:[#allocation10 + $0x20] sm:$0xff] }
 0x406   : > { %1242 = vmatpush.msra.mxu3 %v667_v23 }
 0x407   : > { %v1087_v25 = vmul.f32 1.442695, %v1086_v24  ;;  %v1194_v24 = vadd.f32 %v644_v22, %v2882_v21 }
 0x409   : > { %2226 = vpow2.f32 %v1087_v25  ;;  %2059 = vmatmul.msk.f32.vlgmr.msra.gmra.mxu3 %vm684_vm0, %v1194_v24  ;;  %v2886_v25 = vld [vmem:[%s634_s22 + $0x8] sm:$0xff]  ;;  %s3101_s22 = sld [smem:[#allocation30_spill]] }
 0x40a   : > { %2228 = vrcp.f32 %v989_v17 }
 0x40f   : > { %v2227_v26 = vpop.eup %2226 }
 0x410   : > { %v1089_v27 = vsel %vm754_vm1, %v2227_v26, 0.0  ;;  %v2229_v31 = vpop.eup %2228 }
 0x411   : > { %1090 = vadd.xlane.f32.xlu1 %v1089_v27  ;;  %v991_v33 = vmul.f32 %v2229_v31, %v989_v17  ;;  %vm996_vm11 = vweird.f32 %v2229_v31 }
 0x412   : > { %vm997_vm2 = vmor %vm995_vm14, %vm996_vm11 }
 0x413   : > { %v992_v34 = vsub.f32 1.0, %v991_v33 }
 0x415   : > { %v993_v37 = vmul.f32 %v2229_v31, %v992_v34 }
 0x417   : > { %v1108_v28 = vpop.permute.xlu0 %1107 }
 0x418   : > { %1128 = vmatpush.msra.mxu0 %v1108_v28  ;;  %v666_v28 = vld [vmem:[#allocation10 + $0x18] sm:$0xff] }
 0x42a   : > { %1005 = vrot.lane.b32.xlu1 %v2835_v38, %s2557_s14  ;;  %v994_v38 = vadd.f32 %v2229_v31, %v993_v37 }
 0x42c   : > { %v998_v49 = vsel %vm997_vm2, %v2229_v31, %v994_v38  ;;  %v663_v31 = vld [vmem:[#allocation10] sm:$0xff] }
 0x42d   : > { %v1003_v52 = vsel %vm1000_vm3, %v1002_v51, %v998_v49  ;;  %v2908_v51 = vld [vmem:[%s3061_s7] sm:$0xf] }
 0x42e   : > { %v1004_v54 = vmul.f32 %v2845_v1, %v1003_v52  ;;  %v1220_v52 = vperm.slane %v2908_v51, 1 }
 0x479   : > { %v904_v30 = vpop.f32.mrf.mxu1 }
 0x47a   : > { %2048 = vmatmul.msk.f32.vlgmr.msrb.gmra.mxu2 %vm754_vm1, %v904_v30  ;;  %v664_v30 = vld [vmem:[#allocation10 + $0x8] sm:$0xff] }
 0x47b   : > { %1212 = vmatpush.msrb.mxu2 %v666_v28 }
 0x47d   : > { %1213 = vmatpush.msrb.mxu2 %v665_v29 }
 0x47f   : > { %1214 = vmatpush.msrb.mxu2 %v664_v30 }
 0x481   : > { %1215 = vmatpush.msrb.mxu2 %v663_v31 }
 0x484   : > { %v1091_v32 = vpop.xlane.xlu1 %1090 }
 0x485   : > { %2230 = vrcp.f32 %v1091_v32  ;;  %v1103_v40 = vand.u32 2147483648, %v1091_v32  ;;  %v1101_v42 = vand.u32 2147483647, %v1091_v32  ;;  %vm1097_vm12 = vweird.f32 %v1091_v32 }
 0x486   : > { %2232 = vrcp.f32 %v2560_v8 }
 0x487   : > { %v1104_v45 = vor.u32 1.1754944e-38, %v1103_v40  ;;  %vm1102_vm15 = vcmp.eq.f32.partialorder %v1101_v42, 8.507059e+37  ;;  %v2894_v40 = vld [vmem:[%s3066_s12] sm:$0x7]  ;;  %v2896_v42 = vld [vmem:[#allocation13] sm:$0x7] }
 0x48b   : > { %v2231_v35 = vpop.eup %2230 }
 0x48c   : > { %v1093_v36 = vmul.f32 %v2231_v35, %v1091_v32  ;;  %vm1098_vm10 = vweird.f32 %v2231_v35  ;;  %v2233_v9 = vpop.eup %2232 }
 0x48d   : > { %vm1099_vm13 = vmor %vm1097_vm12, %vm1098_vm10  ;;  %v1164_v10 = vmul.f32 32.0, %v2233_v9  ;;  %vm1168_vm4 = vweird.f32 %v2233_v9 }
 0x48e   : > { %v1094_v39 = vsub.f32 1.0, %v1093_v36 }
 0x48f   : > { %v1165_v11 = vsub.f32 1.0, %v1164_v10 }
 0x490   : > { %v1095_v41 = vmul.f32 %v2231_v35, %v1094_v39 }
 0x492   : > { %v1096_v43 = vadd.f32 %v2231_v35, %v1095_v41 }
 0x494   : > { %v1100_v47 = vsel %vm1099_vm13, %v2231_v35, %v1096_v43  ;;  %v1189_v43 = vperm.slane %v2894_v40, 0 }
 0x495   : > { %v1105_v48 = vsel %vm1102_vm15, %v1104_v45, %v1100_v47  ;;  %v1191_v45 = vperm.slane %v2896_v42, 0 }
 0x496   : > { %v1106_v50 = vmul.f32 %v2227_v26, %v1105_v48  ;;  %v645_v26 = vld [vmem:[%s639_s28 + $0x8] sm:$0xff] }
 0x497   : > { %v1195_v27 = vadd.f32 %v645_v26, %v2886_v25 }
 0x498   : > { %2056 = vmatmul.msk.f32.vlgmr.msra.gmra.mxu0 %vm754_vm1, %v1106_v50  ;;  %v1244_v50 = vpop.f32.mrf.mxu3 }
 0x499   : > { %2060 = vmatmul.msk.f32.gmra.mxu3 %vm684_vm0, %v1195_v27 }
 0x49c   : > { %v1006_v53 = vpop.permute.xlu1 %1005 }
 0x49d   : > { %1026 = vmatpush.msrb.mxu1 %v1006_v53 }
 0x49e   : > { %2052 = vmatmul.msk.f32.vlgmr.msrb.gmra.mxu1 %vm754_vm1, %v1004_v54 }
 0x49f   : > { %1151 = vmatpush.msra.mxu1 %v661_v55  ;;  %v1245_v55 = vadd.f32 %v1244_v50, %v1220_v52 }
 0x4fd   : > { %v927_v59 = vpop.f32.mrf.mxu2 }
 0x4fe   : > { %v951_v60 = vadd.f32 %v2849_v5, %v927_v59  ;;  %v1166_v5 = vmul.f32 %v2233_v9, %v1165_v11 }
 0x500   : > { %v1167_v13 = vadd.f32 %v2233_v9, %v1166_v5 }
 0x502   : > { %v2870_v14 = vsel %vm1168_vm4, %v2233_v9, %v1167_v13 }
 0x515   : > { %v1130_v57 = vpop.f32.mrf.mxu0 }
 0x516   : > { %2057 = vmatmul.msk.f32.vlgmr.msra.gmra.mxu1 %vm754_vm1, %v1130_v57 }
 0x51b   : > { %v1028_v58 = vpop.f32.mrf.mxu1 }
 0x51c   : > { %2053 = vmatmul.msk.f32.vlgmr.msra.gmra.mxu2 %vm754_vm1, %v1028_v58  ;;  %v1247_v53 = vpop.f32.mrf.mxu3 }
 0x51d   : > { %v1248_v54 = vadd.f32 %v1247_v53, %v1220_v52 }
 0x51f   : > { %2063 = vmatpush.xpose.msk.msrb.mxu1 %vm754_vm1, %v1248_v54 }
 0x523   : > { %2064 = vmatpush.xpose.msk.msrb.mxu1 %vm754_vm1, %v1245_v55 }
 0x593   : > { %v1153_v0 = vpop.f32.mrf.mxu1 }
 0x59f   : > { %v1051_v61 = vpop.f32.mrf.mxu2 }
 0x5a0   : > { %v1054_v62 = vadd.f32 %v1051_v61, %v951_v60 }
 0x5a2   : > { %v1156_v1 = vadd.f32 %v1153_v0, %v1054_v62  ;;  %v674_v62 = vld [vmem:[#allocation10 + $0x58] sm:$0xff]  ;;  %v672_v0 = vld [vmem:[#allocation10 + $0x48] sm:$0xff] }
 0x5a3   : > { %1269 = vmatpush.msrb.mxu0 %v674_v62 }
 0x5a4   : > { %v1158_v4 = vadd.f32 %v1157_v63, %v1156_v1  ;;  %v673_v63 = vld [vmem:[#allocation10 + $0x50] sm:$0xff]  ;;  %v671_v1 = vld [vmem:[#allocation10 + $0x40] sm:$0xff] }
 0x5a5   : > { %1270 = vmatpush.msrb.mxu0 %v673_v63 }
 0x5a6   : > { %v1159_v6 = vadd.f32 %v1158_v4, %v2806_v2 }
 0x5a7   : > { %1271 = vmatpush.msrb.mxu0 %v672_v0 }
 0x5a8   : > { %v1160_v7 = vsel %vm684_vm0, %v1159_v6, 0.0 }
 0x5a9   : > { %1161 = vadd.xlane.f32.xlu2 %v1160_v7  ;;  %1272 = vmatpush.msrb.mxu0 %v671_v1 }
 0x5aa   : > { %2061 = vmatmul.msk.f32.vlgmr.msrb.gmra.mxu0 %vm684_vm0, %v2882_v21 }
 0x5ab   : > { %1486 = vmatpush.msra.mxu0 %v675_v18 }
 0x5b2   : > { %2062 = vmatmul.msk.f32.gmra.mxu0 %vm684_vm0, %v2886_v25 }
 0x61c   : > { %v1162_v12 = vpop.xlane.xlu2 %1161 }
 0x61d   : > { %v1170_v15 = vmul.f32 %v2870_v14, %v1162_v12  ;;  %v1250_v12 = vperm.slane %v2908_v51, 2 }
 0x61f   : > { %v1171_v16 = vsub.f32 %v1159_v6, %v1170_v15 }
 0x621   : > { %v1172_v2 = vmul.f32 %v1171_v16, %v1171_v16 }
 0x623   : > { %v1173_v17 = vsel %vm684_vm0, %v1172_v2, 0.0 }
 0x624   : > { %1174 = vadd.xlane.f32.xlu0 %v1173_v17 }
 0x627   : > { %v1274_v13 = vpop.f32.mrf.mxu0 }
 0x62f   : > { %v1277_v15 = vpop.f32.mrf.mxu0 }
 0x630   : > { %v1278_v2 = vadd.f32 %v1277_v15, %v1250_v12 }
 0x632   : > { %1352 = vmatpush.msra.mxu2 %v1278_v2 }
 0x638   : > { %1362 = vrot.lane.b32.xlu0 %v1248_v54, %s2558_s25 }
 0x640   : > { %1495 = vrot.lane.b32.xlu0 %v1248_v54, %s2557_s14 }
 0x697   : > { %v1175_v32 = vpop.xlane.xlu0 %1174 }
 0x698   : > { %v1176_v33 = vmul.f32 %v1175_v32, %v2870_v14 }
 0x69a   : > { %v1177_v34 = vadd.f32 1e-05, %v1176_v33 }
 0x69c   : > { %2234 = vrsqrt.f32 %v1177_v34  ;;  %vm1184_vm6 = vweird.f32 %v1177_v34 }
 0x6a2   : > { %v2235_v35 = vpop.eup %2234 }
 0x6a3   : > { %v1179_v36 = vmul.f32 %v2235_v35, %v1177_v34  ;;  %vm1185_vm5 = vweird.f32 %v2235_v35 }
 0x6a4   : > { %vm1186_vm7 = vmor %vm1184_vm6, %vm1185_vm5 }
 0x6a5   : > { %v1180_v37 = vmul.f32 %v2235_v35, %v1179_v36 }
 0x6a7   : > { %v1181_v39 = vmul.f32 0.5, %v1180_v37 }
 0x6a9   : > { %v1182_v41 = vsub.f32 1.5, %v1181_v39 }
 0x6aa   : > { %v1363_v59 = vpop.permute.xlu0 %1362 }
 0x6ab   : > { %v1183_v38 = vmul.f32 %v2235_v35, %v1182_v41  ;;  %2067 = vmatpush.xpose.msk.msra.mxu1 %vm754_vm1, %v1363_v59 }
 0x6ad   : > { %v1187_v44 = vsel %vm1186_vm7, %v2235_v35, %v1183_v38 }
 0x6ae   : > { %v1188_v46 = vmul.f32 %v1187_v44, %v1171_v16  ;;  %v1275_v16 = vadd.f32 %v1274_v13, %v1250_v12 }
 0x6b0   : > { %v1190_v47 = vmul.f32 %v1189_v43, %v1188_v46  ;;  %1353 = vmatpush.msra.mxu2 %v1275_v16  ;;  %v2935_v17 = vpack.i.bf16 %v1275_v16, %v1278_v2 }
 0x6b2   : > { %v2900_v48 = vadd.f32 %v1191_v45, %v1190_v47  ;;  %v1496_v11 = vpop.permute.xlu0 %1495 }
 0x6b4   : > { %v1193_v49 = vadd.f32 %v2900_v48, %v2808_v3  ;;  %v1196_v3 = vperm.slane %v2908_v51, 0 }
 0x6b6   : > { %2058 = vmatmul.msk.f32.vlgmr.msrb.gmra.mxu2 %vm684_vm0, %v1193_v49 }
 0x739   : > { %v1217_v56 = vpop.f32.mrf.mxu2 }
 0x73a   : > { %v1218_v57 = vadd.f32 %v1217_v56, %v1196_v3 }
 0x73c   : > { %v1280_v58 = vmul.f32 0.35355338, %v1218_v57 }
 0x73e   : > { %1491 = vrot.lane.b32.xlu0 %v1280_v58, %s2557_s14  ;;  %2065 = vmatmul.msk.f32.vlgmr.msrb.gmra.mxu1 %vm754_vm1, %v1280_v58 }
 0x746   : > { %1600 = vrot.lane.b32.xlu0 %v1280_v58, %s2559_s18 }
 0x7b0   : > { %v1492_v29 = vpop.permute.xlu0 %1491 }
 0x7b8   : > { %v1601_v38 = vpop.permute.xlu0 %1600 }
 0x7bb   : > { %v1307_v60 = vpop.f32.mrf.mxu1 }
 0x7bc   : > { %v1311_v61 = vsel %vm1310_vm8, %v1307_v60, -inf }
 0x7bd   : > { %1312 = vmax.xlane.f32.xlu1 %v1311_v61 }
 0x7d6   : > { %1360 = vrot.lane.b32.xlu1 %v1245_v55, %s2558_s25 }
 0x7de   : > { %1493 = vrot.lane.b32.xlu1 %v1245_v55, %s2557_s14 }
 0x7e6   : > { %1602 = vrot.lane.b32.xlu1 %v1245_v55, %s2559_s18 }
 0x830   : > { %v1313_v4 = vpop.xlane.xlu1 %1312 }
 0x831   : > { %v1314_v6 = vsub.f32 %v1307_v60, %v1313_v4 }
 0x833   : > { %v1315_v7 = vmul.f32 1.442695, %v1314_v6 }
 0x835   : > { %2236 = vpow2.f32 %v1315_v7 }
 0x83b   : > { %v2237_v8 = vpop.eup %2236 }
 0x83c   : > { %v1317_v9 = vsel %vm1310_vm8, %v2237_v8, 0.0 }
 0x83d   : > { %1318 = vadd.xlane.f32.xlu2 %v1317_v9 }
 0x848   : > { %v1361_v10 = vpop.permute.xlu1 %1360 }
 0x849   : > { %2068 = vmatpush.xpose.msk.msra.mxu1 %vm754_vm1, %v1361_v10 }
 0x84d   : > { %2073 = vmatpush.xpose.msk.msrb.mxu1 %vm754_vm1, %v1496_v11 }
 0x850   : > { %v1494_v5 = vpop.permute.xlu1 %1493 }
 0x851   : > { %2074 = vmatpush.xpose.msk.msrb.mxu1 %vm754_vm1, %v1494_v5 }
 0x855   : > { %1358 = vrot.lane.b32.xlu2 %v1280_v58, %s2558_s25 }
 0x858   : > { %v1603_v34 = vpop.permute.xlu1 %1602 }
 0x85d   : > { %1604 = vrot.lane.b32.xlu2 %v1248_v54, %s2559_s18 }
 0x8b0   : > { %v1319_v19 = vpop.xlane.xlu2 %1318 }
 0x8b1   : > { %2238 = vrcp.f32 %v1319_v19  ;;  %v1331_v24 = vand.u32 2147483648, %v1319_v19  ;;  %v1329_v26 = vand.u32 2147483647, %v1319_v19  ;;  %vm1325_vm10 = vweird.f32 %v1319_v19 }
 0x8b3   : > { %v1332_v28 = vor.u32 1.1754944e-38, %v1331_v24  ;;  %vm1330_vm12 = vcmp.eq.f32.partialorder %v1329_v26, 8.507059e+37 }
 0x8b7   : > { %v2239_v20 = vpop.eup %2238 }
 0x8b8   : > { %v1321_v21 = vmul.f32 %v2239_v20, %v1319_v19  ;;  %v1359_v22 = vpop.permute.xlu2 %1358  ;;  %vm1326_vm9 = vweird.f32 %v2239_v20 }
 0x8b9   : > { %2069 = vmatmul.msk.f32.vlgmr.msra.gmra.mxu1 %vm754_vm1, %v1359_v22  ;;  %vm1327_vm11 = vmor %vm1325_vm10, %vm1326_vm9 }
 0x8ba   : > { %v1322_v23 = vsub.f32 1.0, %v1321_v21 }
 0x8bc   : > { %v1323_v25 = vmul.f32 %v2239_v20, %v1322_v23 }
 0x8be   : > { %v1324_v27 = vadd.f32 %v2239_v20, %v1323_v25 }
 0x8c0   : > { %v1328_v30 = vsel %vm1327_vm11, %v2239_v20, %v1324_v27  ;;  %v1605_v31 = vpop.permute.xlu2 %1604 }
 0x8c1   : > { %v1333_v32 = vsel %vm1330_vm12, %v1332_v28, %v1328_v30  ;;  %2075 = vmatmul.msk.f32.vlgmr.msrb.gmra.mxu1 %vm754_vm1, %v1492_v29  ;;  %2078 = vmatpush.xpose.msk.msrb.mxu0 %vm754_vm1, %v1605_v31  ;;  %v676_v31 = vld [vmem:[#allocation10 + $0x68] sm:$0xff] }
 0x8c2   : > { %v1334_v33 = vmul.f32 %v2237_v8, %v1333_v32  ;;  %1463 = vmatpush.msrb.mxu3 %v676_v31  ;;  %v677_v32 = vld [vmem:[#allocation10 + $0x70] sm:$0xff]  ;;  %v1771_v31 = vld [vmem:[%s3101_s22 + $0x8] sm:$0xff] }
 0x8c4   : > { %2066 = vmatmul.msk.f32.vlgmr.msra.gmra.mxu2 %vm1310_vm8, %v1334_v33  ;;  %1594 = vmatpush.msra.mxu3 %v677_v32  ;;  %v1770_v32 = vld [vmem:[%s3101_s22] sm:$0xff] }
 0x8c5   : > { %2079 = vmatpush.xpose.msk.msrb.mxu0 %vm754_vm1, %v1603_v34 }
 0x936   : > { %v1387_v35 = vpop.f32.mrf.mxu1 }
 0x937   : > { %v1390_v36 = vsel %vm1310_vm8, %v1387_v35, -inf }
 0x938   : > { %1391 = vmax.xlane.f32.xlu2 %v1390_v36 }
 0x93e   : > { %v1520_v37 = vpop.f32.mrf.mxu1 }
 0x93f   : > { %v1523_v39 = vsel %vm1310_vm8, %v1520_v37, -inf }
 0x940   : > { %1524 = vmax.xlane.f32.xlu1 %v1523_v39 }
 0x947   : > { %v1355_v41 = vpop.f32.mrf.mxu2 }
 0x948   : > { %2072 = vmatmul.msk.f32.vlgmr.msra.gmra.mxu0 %vm754_vm1, %v1355_v41 }
 0x950   : > { %2080 = vmatmul.msk.f32.vlgmr.msrb.gmra.mxu0 %vm754_vm1, %v1601_v38 }
 0x9ab   : > { %v1392_v43 = vpop.xlane.xlu2 %1391 }
 0x9ac   : > { %v1393_v44 = vsub.f32 %v1387_v35, %v1392_v43 }
 0x9ae   : > { %v1394_v45 = vmul.f32 1.442695, %v1393_v44 }
 0x9b0   : > { %2240 = vpow2.f32 %v1394_v45 }
 0x9b3   : > { %v1525_v46 = vpop.xlane.xlu1 %1524 }
 0x9b4   : > { %v1526_v47 = vsub.f32 %v1520_v37, %v1525_v46 }
 0x9b6   : > { %v2241_v49 = vpop.eup %2240  ;;  %v1527_v50 = vmul.f32 1.442695, %v1526_v47 }
 0x9b7   : > { %v1396_v52 = vsel %vm1310_vm8, %v2241_v49, 0.0 }
 0x9b8   : > { %2242 = vpow2.f32 %v1527_v50  ;;  %1397 = vadd.xlane.f32.xlu2 %v1396_v52 }
 0x9be   : > { %v2243_v53 = vpop.eup %2242 }
 0x9bf   : > { %v1529_v54 = vsel %vm1310_vm8, %v2243_v53, 0.0 }
 0x9c0   : > { %1530 = vadd.xlane.f32.xlu1 %v1529_v54 }
 0x9c5   : > { %v2948_v55 = vpop.f32.mrf.mxu0 }
 0x9cd   : > { %v1629_v3 = vpop.f32.mrf.mxu0 }
 0x9ce   : > { %v1632_v56 = vsel %vm1310_vm8, %v1629_v3, -inf }
 0x9cf   : > { %1633 = vmax.xlane.f32.xlu0 %v1632_v56 }
 0x9d0   : > { %2200 = vrot.lane.b32.xlu2 %v2935_v17, %s2558_s25 }
 0x9d9   : > { %2205 = vrot.lane.b32.xlu1 %v2935_v17, %s2557_s14 }
 0xa2b   : > { %v1398_v57 = vpop.xlane.xlu2 %1397 }
 0xa2c   : > { %2244 = vrcp.f32 %v1398_v57  ;;  %v1410_v0 = vand.u32 2147483648, %v1398_v57  ;;  %v1408_v6 = vand.u32 2147483647, %v1398_v57  ;;  %vm1404_vm14 = vweird.f32 %v1398_v57 }
 0xa2e   : > { %v1411_v9 = vor.u32 1.1754944e-38, %v1410_v0  ;;  %vm1409_vm2 = vcmp.eq.f32.partialorder %v1408_v6, 8.507059e+37 }
 0xa32   : > { %v2245_v58 = vpop.eup %2244 }
 0xa33   : > { %v1400_v59 = vmul.f32 %v2245_v58, %v1398_v57  ;;  %v2201_v60 = vpop.permute.xlu2 %2200  ;;  %v1531_v61 = vpop.xlane.xlu1 %1530  ;;  %vm1405_vm13 = vweird.f32 %v2245_v58 }
 0xa34   : > { %v2202_v62 = vunpack.i.l.bf16 %v2201_v60  ;;  %2246 = vrcp.f32 %v1531_v61  ;;  %v2203_v1 = vunpack.i.h.bf16 %v2201_v60  ;;  %vm1406_vm15 = vmor %vm1404_vm14, %vm1405_vm13  ;;  %v1543_v20 = vand.u32 2147483648, %v1531_v61 }
 0xa35   : > { %v1401_v63 = vsub.f32 1.0, %v1400_v59  ;;  %vm1537_vm4 = vweird.f32 %v1531_v61  ;;  %v1541_v21 = vand.u32 2147483647, %v1531_v61  ;;  %v1709_v59 = vperm.slane %v2908_v51, 3  ;;  %v1741_v51 = vld [vmem:[%s3062_s8 + $0x18] sm:$0xff] }
 0xa36   : > { %1439 = vmatpush.msrb.mxu2 %v2202_v62  ;;  %v1544_v23 = vor.u32 1.1754944e-38, %v1543_v20  ;;  %vm1782_vm13 = vcmask 523264  }
 0xa37   : > { %v1402_v4 = vmul.f32 %v2245_v58, %v1401_v63  ;;  %vm1542_vm6 = vcmp.eq.f32.partialorder %v1541_v21, 8.507059e+37 }
 0xa38   : > { %1440 = vmatpush.msrb.mxu2 %v2203_v1 }
 0xa39   : > { %v1403_v7 = vadd.f32 %v2245_v58, %v1402_v4 }
 0xa3a   : > { %v2247_v8 = vpop.eup %2246 }
 0xa3b   : > { %v1407_v10 = vsel %vm1406_vm15, %v2245_v58, %v1403_v7  ;;  %v1533_v11 = vmul.f32 %v2247_v8, %v1531_v61  ;;  %vm1538_vm3 = vweird.f32 %v2247_v8 }
 0xa3c   : > { %v1412_v5 = vsel %vm1409_vm2, %v1411_v9, %v1407_v10  ;;  %vm1539_vm5 = vmor %vm1537_vm4, %vm1538_vm3  ;;  %v1738_v9 = vld [vmem:[%s3062_s8] sm:$0xff]  ;;  %v1777_v10 = vld [vmem:[%s3101_s22 + $0x38] sm:$0xff] }
 0xa3d   : > { %v1534_v13 = vsub.f32 1.0, %v1533_v11  ;;  %v1413_v12 = vmul.f32 %v2241_v49, %v1412_v5  ;;  %v1776_v11 = vld [vmem:[%s3101_s22 + $0x30] sm:$0xff]  ;;  %1794 = vmatpush.msra.mxu0 %v1777_v10  ;;  %v1775_v5 = vld [vmem:[%s3101_s22 + $0x28] sm:$0xff] }
 0xa3f   : > { %2070 = vmatmul.msk.f32.vlgmr.msrb.gmra.mxu2 %vm1310_vm8, %v1413_v12  ;;  %v1535_v15 = vmul.f32 %v2247_v8, %v1534_v13  ;;  %1795 = vmatpush.msra.mxu0 %v1776_v11 }
 0xa41   : > { %v1536_v18 = vadd.f32 %v2247_v8, %v1535_v15  ;;  %v1774_v15 = vld [vmem:[%s3101_s22 + $0x20] sm:$0xff]  ;;  %1796 = vmatpush.msra.mxu0 %v1775_v5 }
 0xa42   : > { %v1634_v16 = vpop.xlane.xlu0 %1633 }
 0xa43   : > { %v1635_v2 = vsub.f32 %v1629_v3, %v1634_v16  ;;  %v1540_v22 = vsel %vm1539_vm5, %v2247_v8, %v1536_v18  ;;  %1797 = vmatpush.msra.mxu0 %v1774_v15 }
 0xa44   : > { %v1545_v25 = vsel %vm1542_vm6, %v1544_v23, %v1540_v22 }
 0xa45   : > { %v1636_v19 = vmul.f32 1.442695, %v1635_v2  ;;  %v1546_v30 = vmul.f32 %v2243_v53, %v1545_v25  ;;  %v678_v53 = vld [vmem:[#allocation10 + $0x78] sm:$0xff] }
 0xa46   : > { %v1773_v2 = vld [vmem:[%s3101_s22 + $0x18] sm:$0xff] }
 0xa47   : > { %2248 = vpow2.f32 %v1636_v19  ;;  %1798 = vmatpush.msra.mxu0 %v1773_v2 }
 0xa4b   : > { %v2206_v24 = vpop.permute.xlu1 %2205 }
 0xa4c   : > { %v2207_v26 = vunpack.i.l.bf16 %v2206_v24  ;;  %v2208_v28 = vunpack.i.h.bf16 %v2206_v24  ;;  %v1734_v24 = vperm.slane %v2894_v40, 1 }
 0xa4d   : > { %v2249_v27 = vpop.eup %2248 }
 0xa4e   : > { %1570 = vmatpush.msra.mxu2 %v2207_v26  ;;  %v1638_v29 = vsel %vm1310_vm8, %v2249_v27, 0.0 }
 0xa4f   : > { %1639 = vadd.xlane.f32.xlu0 %v1638_v29 }
 0xa50   : > { %1571 = vmatpush.msra.mxu2 %v2208_v28 }
 0xa51   : > { %2076 = vmatmul.msk.f32.vlgmr.msra.gmra.mxu2 %vm1310_vm8, %v1546_v30  ;;  %v1772_v30 = vld [vmem:[%s3101_s22 + $0x10] sm:$0xff] }
 0xa52   : > { %1703 = vmatpush.msrb.mxu2 %v678_v53  ;;  %1799 = vmatpush.msra.mxu0 %v1772_v30 }
 0xa54   : > { %1800 = vmatpush.msra.mxu0 %v1771_v31 }
 0xa56   : > { %1801 = vmatpush.msra.mxu0 %v1770_v32 }
 0xa63   : > { %2210 = vrot.lane.b32.xlu0 %v2935_v17, %s2559_s18 }
 0xac2   : > { %v1442_v33 = vpop.f32.mrf.mxu2  ;;  %v1640_v34 = vpop.xlane.xlu0 %1639 }
 0xac3   : > { %2250 = vrcp.f32 %v1640_v34  ;;  %2071 = vmatmul.msk.f32.vlgmr.msrb.gmra.mxu3 %vm754_vm1, %v1442_v33  ;;  %v1652_v38 = vand.u32 2147483648, %v1640_v34  ;;  %vm1646_vm9 = vweird.f32 %v1640_v34  ;;  %v1650_v43 = vand.u32 2147483647, %v1640_v34  ;;  %v2214_v33 = vld [vmem:[%s3102_s9] ss:$0 sm:$0xff] }
 0xac4   : > { %1761 = vmatpush.msrb.mxu3 %v1741_v51 }
 0xac5   : > { %v1653_v44 = vor.u32 1.1754944e-38, %v1652_v38  ;;  %vm1651_vm11 = vcmp.eq.f32.partialorder %v1650_v43, 8.507059e+37 }
 0xac9   : > { %v2251_v35 = vpop.eup %2250 }
 0xaca   : > { %v1642_v36 = vmul.f32 %v2251_v35, %v1640_v34  ;;  %vm1647_vm7 = vweird.f32 %v2251_v35 }
 0xacb   : > { %vm1648_vm10 = vmor %vm1646_vm9, %vm1647_vm7 }
 0xacc   : > { %v1643_v37 = vsub.f32 1.0, %v1642_v36 }
 0xace   : > { %v1644_v39 = vmul.f32 %v2251_v35, %v1643_v37  ;;  %v2215_v37 = vld [vmem:[#allocation11] ss:$0 sm:$0xff] }
 0xad0   : > { %v1645_v41 = vadd.f32 %v2251_v35, %v1644_v39 }
 0xad2   : > { %v1649_v17 = vsel %vm1648_vm10, %v2251_v35, %v1645_v41 }
 0xad3   : > { %v1654_v47 = vsel %vm1651_vm11, %v1653_v44, %v1649_v17 }
 0xad4   : > { %v1573_v45 = vpop.f32.mrf.mxu2  ;;  %v1655_v52 = vmul.f32 %v2249_v27, %v1654_v47  ;;  %v1736_v27 = vperm.slane %v2896_v42, 1 }
 0xad5   : > { %2077 = vmatmul.msk.f32.vlgmr.msra.gmra.mxu3 %vm754_vm1, %v1573_v45  ;;  %v2211_v46 = vpop.permute.xlu0 %2210 }
 0xad6   : > { %v2212_v49 = vunpack.i.l.bf16 %v2211_v46  ;;  %v2213_v50 = vunpack.i.h.bf16 %v2211_v46 }
 0xad8   : > { %1679 = vmatpush.msra.mxu1 %v2212_v49 }
 0xada   : > { %1680 = vmatpush.msra.mxu1 %v2213_v50 }
 0xadb   : > { %2081 = vmatmul.msk.f32.vlgmr.msra.gmra.mxu1 %vm1310_vm8, %v1655_v52 }
 0xb46   : > { %v1465_v3 = vpop.f32.mrf.mxu3 }
 0xb47   : > { %v1489_v57 = vadd.f32 %v2948_v55, %v1465_v3  ;;  %v1739_v55 = vld [vmem:[%s3062_s8 + $0x8] sm:$0xff] }
 0xb58   : > { %v1682_v54 = vpop.f32.mrf.mxu1  ;;  %v1596_v56 = vpop.f32.mrf.mxu3 }
 0xb59   : > { %2082 = vmatmul.msk.f32.vlgmr.msrb.gmra.mxu2 %vm754_vm1, %v1682_v54  ;;  %v1599_v58 = vadd.f32 %v1596_v56, %v1489_v57 }
 0xbdc   : > { %v1705_v60 = vpop.f32.mrf.mxu2 }
 0xbdd   : > { %v1708_v61 = vadd.f32 %v1705_v60, %v1599_v58 }
 0xbdf   : > { %v1710_v62 = vadd.f32 %v1709_v59, %v1708_v61  ;;  %v1829_v59 = vperm.slane %v2894_v40, 2  ;;  %v1831_v61 = vperm.slane %v2896_v42, 2 }
 0xbe1   : > { %v1711_v63 = vadd.f32 %v1710_v62, %v2900_v48  ;;  %v1740_v48 = vld [vmem:[%s3062_s8 + $0x10] sm:$0xff] }
 0xbe2   : > { %1762 = vmatpush.msrb.mxu3 %v1740_v48 }
 0xbe3   : > { %v1712_v0 = vsel %vm684_vm0, %v1711_v63, 0.0 }
 0xbe4   : > { %1713 = vadd.xlane.f32.xlu2 %v1712_v0  ;;  %1763 = vmatpush.msrb.mxu3 %v1739_v55 }
 0xbe6   : > { %1764 = vmatpush.msrb.mxu3 %v1738_v9 }
 0xc57   : > { %v1714_v1 = vpop.xlane.xlu2 %1713 }
 0xc58   : > { %v1715_v4 = vmul.f32 %v1714_v1, %v2870_v14 }
 0xc5a   : > { %v1716_v6 = vsub.f32 %v1711_v63, %v1715_v4 }
 0xc5c   : > { %v1717_v7 = vmul.f32 %v1716_v6, %v1716_v6 }
 0xc5e   : > { %v1718_v8 = vsel %vm684_vm0, %v1717_v7, 0.0 }
 0xc5f   : > { %1719 = vadd.xlane.f32.xlu0 %v1718_v8 }
 0xcd2   : > { %v1720_v13 = vpop.xlane.xlu0 %1719 }
 0xcd3   : > { %v1721_v12 = vmul.f32 %v1720_v13, %v2870_v14 }
 0xcd5   : > { %v1722_v16 = vadd.f32 1e-05, %v1721_v12 }
 0xcd7   : > { %2252 = vrsqrt.f32 %v1722_v16  ;;  %vm1729_vm8 = vweird.f32 %v1722_v16 }
 0xcdd   : > { %v2253_v18 = vpop.eup %2252 }
 0xcde   : > { %v1724_v19 = vmul.f32 %v2253_v18, %v1722_v16  ;;  %vm1730_vm1 = vweird.f32 %v2253_v18 }
 0xcdf   : > { %vm1731_vm12 = vmor %vm1729_vm8, %vm1730_vm1 }
 0xce0   : > { %v1725_v20 = vmul.f32 %v2253_v18, %v1724_v19 }
 0xce2   : > { %v1726_v21 = vmul.f32 0.5, %v1725_v20 }
 0xce4   : > { %v1727_v22 = vsub.f32 1.5, %v1726_v21 }
 0xce6   : > { %v1728_v23 = vmul.f32 %v2253_v18, %v1727_v22 }
 0xce8   : > { %v1732_v25 = vsel %vm1731_vm12, %v2253_v18, %v1728_v23 }
 0xce9   : > { %v1733_v26 = vmul.f32 %v1732_v25, %v1716_v6 }
 0xceb   : > { %v1735_v28 = vmul.f32 %v1734_v24, %v1733_v26 }
 0xced   : > { %v1737_v29 = vadd.f32 %v1736_v27, %v1735_v28 }
 0xcef   : > { %2083 = vmatmul.msk.f32.vlgmr.msrb.gmra.mxu3 %vm684_vm0, %v1737_v29 }
 0xd72   : > { %v1766_v34 = vpop.f32.mrf.mxu3 }
 0xd73   : > { %v1767_v35 = vadd.f32 %v2214_v33, %v1766_v34 }
 0xd75   : > { %v1769_v36 = vmax.f32 %v1767_v35, 0.0 }
 0xd77   : > { %2084 = vmatmul.msk.f32.vlgmr.msra.gmra.mxu0 %vm1782_vm13, %v1769_v36 }
 0xdf4   : > { %v1803_v39 = vpop.f32.mrf.mxu0 }
 0xdf5   : > { %v1804_v41 = vadd.f32 %v2215_v37, %v1803_v39 }
 0xdf7   : > { %v1806_v38 = vadd.f32 %v1804_v41, %v1737_v29 }
 0xdf9   : > { %v1807_v43 = vsel %vm684_vm0, %v1806_v38, 0.0 }
 0xdfa   : > { %1808 = vadd.xlane.f32.xlu1 %v1807_v43 }
 0xe6d   : > { %v1809_v17 = vpop.xlane.xlu1 %1808 }
 0xe6e   : > { %v1810_v44 = vmul.f32 %v1809_v17, %v2870_v14 }
 0xe70   : > { %v1811_v45 = vsub.f32 %v1806_v38, %v1810_v44 }
 0xe72   : > { %v1812_v46 = vmul.f32 %v1811_v45, %v1811_v45 }
 0xe74   : > { %v1813_v47 = vsel %vm684_vm0, %v1812_v46, 0.0 }
 0xe75   : > { %1814 = vadd.xlane.f32.xlu2 %v1813_v47 }
 0xee8   : > { %v1815_v49 = vpop.xlane.xlu2 %1814 }
 0xee9   : > { %v1816_v50 = vmul.f32 %v1815_v49, %v2870_v14 }
 0xeeb   : > { %v1817_v52 = vadd.f32 1e-05, %v1816_v50 }
 0xeed   : > { %2254 = vrsqrt.f32 %v1817_v52  ;;  %vm1824_vm15 = vweird.f32 %v1817_v52 }
 0xef3   : > { %v2255_v53 = vpop.eup %2254 }
 0xef4   : > { %v1819_v54 = vmul.f32 %v2255_v53, %v1817_v52  ;;  %vm1825_vm14 = vweird.f32 %v2255_v53 }
 0xef5   : > { %vm1826_vm2 = vmor %vm1824_vm15, %vm1825_vm14 }
 0xef6   : > { %v1820_v3 = vmul.f32 %v2255_v53, %v1819_v54 }
 0xef8   : > { %v1821_v56 = vmul.f32 0.5, %v1820_v3 }
 0xefa   : > { %v1822_v57 = vsub.f32 1.5, %v1821_v56 }
 0xefc   : > { %v1823_v58 = vmul.f32 %v2255_v53, %v1822_v57 }
 0xefe   : > { %v1827_v14 = vsel %vm1826_vm2, %v2255_v53, %v1823_v58 }
 0xeff   : > { %v1828_v60 = vmul.f32 %v1827_v14, %v1811_v45 }
 0xf01   : > { %v1830_v62 = vmul.f32 %v1829_v59, %v1828_v60 }
 0xf03   : > { %v1832_v63 = vadd.f32 %v1831_v61, %v1830_v62 }
 0xf05   : > { %1833 = vst.msk [vmem:[%s629_s5] sm:$0xff] %vm684_vm0, %v1832_v63 }
 0xf06   : > { %2493 = shalt.err (!%p2490_p12)
}
 0xf07   : > { %2115 = dma.vmem_to_hbm [thread:$0]  (%p2726_p0), %s1848_s23, 128, %s1850_s16, %s1835_s20  }
 0xf08 PF: > { %s3105_s19 = sld [smem:[#allocation22_spill]]  ;;  %s1861_s26 = sand.u32 1, %s2536_s29  }
 0xf09   : > { %s1862_s9 = scalar_lea.sflag [#allocation4], %s1861_s26 }
 0xf0e   : > { %p3106_p5 = scmp.ge.s32.totalorder %s3105_s19, 2 }
 0xf10   : > { %p2141_p11 = pnand %p3106_p5, %p2732_p6 }
 0xf12   : > { %p2142_p2 = pneg %p2141_p11 }
 0xf14   : > { %2531 = dma.done.wait (%p2142_p2), %s1862_s9, 128  }
 0xf15   : > { %2533 = vsyncadd (%p2142_p2), %s1862_s9, 4294967168  ;;  %s3107_s16 = sld [smem:[#allocation23_spill]]  ;;  %s3110_s29 = smov %s2540_s30 }
 0xf16   : > { %s3108_s17 = sld [smem:[#allocation21_spill]] }
 0xf17   : > { %s3109_s15 = sld [smem:[#allocation24_spill]] }
 0xf1b   : > { %p32_p4 = scmp.ge.s32.totalorder %s3107_s16, 4  }
 0xf1c   : > { %s3111_s30 = smov %s3108_s17 }
 0xf1d   :  { %34 = sbr.rel (!%p32_p4) target bundleno = 18 (0x12), region = 160 }
 0xf22   :  { %1868 = vsyncpa [#allocation3], 1 }
 0xf23   :  { %1870 = vsyncpa [#allocation3 + $0x1], 1 }
 0xf24   :  { %1871 = vsyncpa [#allocation6], 1 }
 0xf25   :  { %1873 = vsyncpa [#allocation6 + $0x1], 1 }
 0xf26   :  { %1874 = vsyncpa [#allocation9], 1 }
 0xf27   :  { %1875 = vsyncpa [#allocation12], 1 }
 0xf28   :  { %1876 = vsyncpa [#allocation4], 1 }
 0xf29   :  { %1878 = vsyncpa [#allocation4 + $0x1], 1 }

</bundles_post_ra>
